<compile_context>
chip_gen: v6e
topology: v6e:2x2x1
jax: 0.10.0
libtpu: 0.0.40
codegen_flags: <defaults>
</compile_context>

<pallas_src>
import math

import jax
import jax.numpy as jnp
from jax.experimental import pallas as pl
from jax.experimental.pallas import tpu as pltpu  # noqa: F401  (kept for TPU-specific tuning hooks)

# ---------------- config (small, deterministic) ----------------
USERNUM = 10
ITEMNUM = 20
MAXLEN = 8                      # T
ITEM_HIDDEN = 16
USER_HIDDEN = 16
HIDDEN = ITEM_HIDDEN + USER_HIDDEN   # H = 32
NUM_HEADS = 2
NUM_BLOCKS = 2
BATCH = 2

HEAD_DIM = HIDDEN // NUM_HEADS
EPS_LN = 1e-8
NEG_INF = -(2.0 ** 32) + 1.0


# ---------------- Pallas kernel ----------------
def _layernorm(x, gamma, beta):
    mu = jnp.mean(x, axis=-1, keepdims=True)
    var = jnp.mean((x - mu) ** 2, axis=-1, keepdims=True)
    return gamma * (x - mu) * jax.lax.rsqrt(var + EPS_LN) + beta


def sasrec_kernel(x_ref, mask_ref, wqkv_ref, bqkv_ref,
                  w1_ref, b1_ref, w2_ref, b2_ref,
                  gamma_ref, beta_ref,
                  pos_ref, neg_ref, ist_ref,
                  loss_ref, auc_ref, attn_ref):
    B, T, H, NH, d = BATCH, MAXLEN, HIDDEN, NUM_HEADS, HEAD_DIM
    scale = 1.0 / math.sqrt(d)

    x = x_ref[...]            # (B*T, H)  -- already masked at padded positions
    mask = mask_ref[...]      # (B*T, 1)
    gamma = gamma_ref[...]    # (1, H)
    beta = beta_ref[...]      # (1, H)

    row = jax.lax.broadcasted_iota(jnp.int32, (T, T), 0)
    col = jax.lax.broadcasted_iota(jnp.int32, (T, T), 1)
    causal_keep = (col <= row)[None, :, :]            # (1, T, T)
    ones_q = jnp.ones((B, 1, H), jnp.float32)

    attn_pieces = []
    for l in range(NUM_BLOCKS):
        # ---- shared layernorm applied before attention (reference forward) ----
        ln = _layernorm(x, gamma, beta)               # (B*T, H)
        ln3 = ln.reshape(B, T, H)                     # (B, T, H)

        # key / query padding masks: sign(|sum(keys, -1)|)
        q_valid = (jnp.abs(jnp.sum(ln3, axis=-1, keepdims=True)) > 0.0)  # (B, T, 1)
        k_sum = jnp.einsum('bqd,bkd->bqk', ones_q, ln3,
                           preferred_element_type=jnp.float32)           # (B, 1, T)
        keep = causal_keep & (jnp.abs(k_sum) > 0.0)                      # (B, T, T)
        q_mask = q_valid.astype(jnp.float32)                             # (B, T, 1)

        # ---- fused Q|K|V projection: one (B*T, H) x (H, 3H) matmul ----
        qkv = jnp.maximum(
            jnp.dot(ln, wqkv_ref[l], preferred_element_type=jnp.float32)
            + bqkv_ref[l], 0.0)                                          # (B*T, 3H)
        qkv3 = qkv.reshape(B, T, 3 * H)

        head_outs = []
        for hd in range(NH):
            qh = qkv3[:, :, hd * d:(hd + 1) * d]                         # (B, T, d)
            kh = qkv3[:, :, H + hd * d:H + (hd + 1) * d]
            vh = qkv3[:, :, 2 * H + hd * d:2 * H + (hd + 1) * d]
            s = jnp.einsum('bqd,bkd->bqk', qh, kh,
                           preferred_element_type=jnp.float32) * scale   # (B, T, T)
            s = jnp.where(keep, s, NEG_INF)                # combined key+causal mask
            e = jnp.exp(s - jnp.max(s, axis=-1, keepdims=True))
            a = e * pl.reciprocal(jnp.sum(e, axis=-1, keepdims=True), approx=True)
            attn_pieces.append(a)                          # pre-query-mask weights
            head_outs.append(
                jnp.einsum('bqk,bkd->bqd', a * q_mask, vh,
                           preferred_element_type=jnp.float32))          # (B, T, d)

        att = jnp.concatenate(head_outs, axis=-1).reshape(B * T, H) + ln  # residual

        # ---- position-wise feed forward (conv1d kernel=1 == matmul) ----
        h1 = jnp.maximum(
            jnp.dot(att, w1_ref[l], preferred_element_type=jnp.float32) + b1_ref[l], 0.0)
        h2 = jnp.dot(h1, w2_ref[l], preferred_element_type=jnp.float32) + b2_ref[l]
        x = (h2 + att) * mask                              # residual + padding mask

    seq = _layernorm(x, gamma, beta)                       # final layernorm, (B*T, H)

    # single store of all attention weights: (B, T, L*NH*T) -> 32 dense lanes
    attn_ref[...] = jnp.concatenate(attn_pieces, axis=-1)

    # ---- fused BPR loss / AUC (no second pallas_call, no HBM round trip) ----
    pos_e = pos_ref[...]
    neg_e = neg_ref[...]
    ist = ist_ref[...]
    pos_logits = jnp.sum(pos_e * seq, axis=-1, keepdims=True)   # (B*T, 1)
    neg_logits = jnp.sum(neg_e * seq, axis=-1, keepdims=True)
    sp = jax.nn.sigmoid(pos_logits)
    sn = jax.nn.sigmoid(neg_logits)
    den = jnp.sum(ist, keepdims=True)                            # (1, 1)
    num = jnp.sum(-(jnp.log(sp + 1e-24) * ist)
                  - jnp.log(1.0 - sn + 1e-24) * ist, keepdims=True)
    loss_ref[...] = num / den
    diff = pos_logits - neg_logits
    sgn = jnp.where(diff > 0.0, 1.0, jnp.where(diff < 0.0, -1.0, 0.0))
    auc_ref[...] = jnp.sum((sgn + 1.0) * 0.5 * ist, keepdims=True) / den


# ---------------- wrappers ----------------
def sasrec_pallas(x_flat, mask_flat, wqkv, bqkv, w1, b1, w2, b2,
                  gamma, beta, pos_e, neg_e, ist):
    out_shape = (
        jax.ShapeDtypeStruct((1, 1), jnp.float32),                                   # loss
        jax.ShapeDtypeStruct((1, 1), jnp.float32),                                   # auc
        jax.ShapeDtypeStruct((BATCH, MAXLEN, NUM_BLOCKS * NUM_HEADS * MAXLEN),
                             jnp.float32),                                           # attn
    )
    # No grid: whole problem fits comfortably in VMEM on every TPU generation,
    # so everything runs in a single invocation with full-array blocks.
    return pl.pallas_call(sasrec_kernel, out_shape=out_shape)(
        x_flat, mask_flat, wqkv, bqkv, w1, b1, w2, b2, gamma, beta,
        pos_e, neg_e, ist)


def init_params(key):
    ks = jax.random.split(key, 10)
    std = 0.02
    item_tab = jax.random.normal(ks[0], (ITEMNUM + 1, ITEM_HIDDEN), jnp.float32) * std
    item_tab = item_tab.at[0].set(0.0)  # zero_pad=True
    user_tab = jax.random.normal(ks[1], (USERNUM + 1, USER_HIDDEN), jnp.float32) * std
    pos_tab = jax.random.normal(ks[2], (MAXLEN, HIDDEN), jnp.float32) * std

    def w(k):
        return jax.random.normal(k, (NUM_BLOCKS, HIDDEN, HIDDEN), jnp.float32) * std

    zeros_b = jnp.zeros((NUM_BLOCKS, 1, HIDDEN), jnp.float32)
    return dict(
        item_tab=item_tab, user_tab=user_tab, pos_tab=pos_tab,
        wq=w(ks[3]), bq=zeros_b,
        wk=w(ks[4]), bk=zeros_b,
        wv=w(ks[5]), bv=zeros_b,
        w1=w(ks[6]), b1=zeros_b,
        w2=w(ks[7]), b2=zeros_b,
        gamma=jnp.ones((1, HIDDEN), jnp.float32),
        beta=jnp.zeros((1, HIDDEN), jnp.float32),
    )


def sasrec_forward(params, u, seq, pos, neg):
    B, T = seq.shape
    H = HIDDEN
    # embeddings (gather glue stays in plain JAX)
    seq_emb = params["item_tab"][seq] * math.sqrt(ITEM_HIDDEN)          # (B, T, ih)
    pos_emb_seq = params["pos_tab"][jnp.arange(T)]                      # (T, H)
    u_emb = params["user_tab"][u] * math.sqrt(USER_HIDDEN)              # (B, uh)
    u_exp = jnp.broadcast_to(u_emb[:, None, :], (B, T, USER_HIDDEN))    # (B, T, uh)

    x = jnp.concatenate([seq_emb, u_exp], axis=-1) + pos_emb_seq[None]
    mask = (seq > 0).astype(jnp.float32)[..., None]                     # (B, T, 1)
    x = x * mask

    # flatten batch*time once in the wrapper (lane width H stays dense)
    x_flat = x.reshape(B * T, H).astype(jnp.float32)
    mask_flat = mask.reshape(B * T, 1)

    # pack the fused QKV weight/bias: (L, H, 3H) / (L, 1, 3H)
    wqkv = jnp.concatenate([params["wq"], params["wk"], params["wv"]], axis=-1)
    bqkv = jnp.concatenate([params["bq"], params["bk"], params["bv"]], axis=-1)

    # loss-side embeddings
    pos_flat = pos.reshape(-1)
    neg_flat = neg.reshape(-1)
    user_flat = u_exp.reshape(-1, USER_HIDDEN)
    pos_e = jnp.concatenate(
        [params["item_tab"][pos_flat] * math.sqrt(ITEM_HIDDEN), user_flat], axis=1)
    neg_e = jnp.concatenate(
        [params["item_tab"][neg_flat] * math.sqrt(ITEM_HIDDEN), user_flat], axis=1)
    ist = (pos_flat > 0).astype(jnp.float32)[:, None]

    loss, auc, attn = sasrec_pallas(
        x_flat, mask_flat, wqkv, bqkv,
        params["w1"], params["b1"], params["w2"], params["b2"],
        params["gamma"], params["beta"], pos_e, neg_e, ist)

    # attention weights in the torch layout: list of (num_heads * B, T, T)
    attn5 = attn.reshape(B, T, NUM_BLOCKS, NUM_HEADS, T).transpose(0, 2, 3, 1, 4)
    attn_list = [
        jnp.transpose(attn5[:, l], (1, 0, 2, 3)).reshape(NUM_HEADS * B, T, T)
        for l in range(NUM_BLOCKS)
    ]
    return loss[0, 0], attn_list, auc[0, 0], 0.0   # l2_emb = 0.0 -> no l2 term


if __name__ == "__main__":
    key = jax.random.PRNGKey(0)
    pkey, k1, k2, k3, k4 = jax.random.split(key, 5)
    params = init_params(pkey)

    u = jax.random.randint(k1, (BATCH,), 1, USERNUM + 1)
    seq = jax.random.randint(k2, (BATCH, MAXLEN), 0, ITEMNUM + 1)   # 0 = padding
    pos = jax.random.randint(k3, (BATCH, MAXLEN), 1, ITEMNUM + 1)
    neg = jax.random.randint(k4, (BATCH, MAXLEN), 1, ITEMNUM + 1)

    loss, attn_weights, auc, l2 = sasrec_forward(params, u, seq, pos, neg)
    jax.block_until_ready((loss, attn_weights, auc))
    print("KERNEL_OK")
</pallas_src>

<mosaic_0001>
module attributes {stable_mosaic.version = 11 : i64} {
  func.func @sasrec_kernel(%arg0: memref<16x32xf32, #tpu.memory_space<vmem>>, %arg1: memref<16x1xf32, #tpu.memory_space<vmem>>, %arg2: memref<2x32x96xf32, #tpu.memory_space<vmem>>, %arg3: memref<2x1x96xf32, #tpu.memory_space<vmem>>, %arg4: memref<2x32x32xf32, #tpu.memory_space<vmem>>, %arg5: memref<2x1x32xf32, #tpu.memory_space<vmem>>, %arg6: memref<2x32x32xf32, #tpu.memory_space<vmem>>, %arg7: memref<2x1x32xf32, #tpu.memory_space<vmem>>, %arg8: memref<1x32xf32, #tpu.memory_space<vmem>>, %arg9: memref<1x32xf32, #tpu.memory_space<vmem>>, %arg10: memref<16x32xf32, #tpu.memory_space<vmem>>, %arg11: memref<16x32xf32, #tpu.memory_space<vmem>>, %arg12: memref<16x1xf32, #tpu.memory_space<vmem>>, %arg13: memref<1x1xf32, #tpu.memory_space<vmem>>, %arg14: memref<1x1xf32, #tpu.memory_space<vmem>>, %arg15: memref<2x8x32xf32, #tpu.memory_space<vmem>>) attributes {dimension_semantics = [], scalar_prefetch = 0 : i64, scratch_operands = 0 : i64, tpu.core_type = #tpu.core_type<tc>} {
    %c0 = arith.constant 0 : index
    %c0_0 = arith.constant 0 : index
    %0 = vector.load %arg0[%c0, %c0_0] : memref<16x32xf32, #tpu.memory_space<vmem>>, vector<16x32xf32>
    %c0_1 = arith.constant 0 : index
    %c0_2 = arith.constant 0 : index
    %1 = vector.load %arg1[%c0_1, %c0_2] : memref<16x1xf32, #tpu.memory_space<vmem>>, vector<16x1xf32>
    %c0_3 = arith.constant 0 : index
    %c0_4 = arith.constant 0 : index
    %2 = vector.load %arg8[%c0_3, %c0_4] : memref<1x32xf32, #tpu.memory_space<vmem>>, vector<1x32xf32>
    %c0_5 = arith.constant 0 : index
    %c0_6 = arith.constant 0 : index
    %3 = vector.load %arg9[%c0_5, %c0_6] : memref<1x32xf32, #tpu.memory_space<vmem>>, vector<1x32xf32>
    %4 = tpu.iota {dimensions = array<i32: 0>} : vector<8x8xi32>
    %5 = tpu.iota {dimensions = array<i32: 1>} : vector<8x8xi32>
    %6 = arith.cmpi sle, %5, %4 : vector<8x8xi32>
    %7 = vector.shape_cast %6 : vector<8x8xi1> to vector<1x8x8xi1>
    %cst = arith.constant 1.000000e+00 : f32
    %8 = vector.broadcast %cst : f32 to vector<2x1x32xf32>
    %cst_7 = arith.constant dense<0.000000e+00> : vector<16xf32>
    %9 = vector.multi_reduction <add>, %0, %cst_7 [1] : vector<16x32xf32> to vector<16xf32>
    %10 = vector.shape_cast %9 : vector<16xf32> to vector<16x1xf32>
    %cst_8 = arith.constant 3.200000e+01 : f32
    %11 = vector.broadcast %cst_8 : f32 to vector<16x1xf32>
    %12 = arith.divf %10, %11 : vector<16x1xf32>
    %13 = vector.broadcast %12 : vector<16x1xf32> to vector<16x32xf32>
    %14 = arith.subf %0, %13 : vector<16x32xf32>
    %15 = arith.mulf %14, %14 : vector<16x32xf32>
    %cst_9 = arith.constant dense<0.000000e+00> : vector<16xf32>
    %16 = vector.multi_reduction <add>, %15, %cst_9 [1] : vector<16x32xf32> to vector<16xf32>
    %17 = vector.shape_cast %16 : vector<16xf32> to vector<16x1xf32>
    %cst_10 = arith.constant 3.200000e+01 : f32
    %18 = vector.broadcast %cst_10 : f32 to vector<16x1xf32>
    %19 = arith.divf %17, %18 : vector<16x1xf32>
    %20 = vector.broadcast %12 : vector<16x1xf32> to vector<16x32xf32>
    %21 = arith.subf %0, %20 : vector<16x32xf32>
    %22 = vector.broadcast %2 : vector<1x32xf32> to vector<16x32xf32>
    %23 = arith.mulf %22, %21 : vector<16x32xf32>
    %cst_11 = arith.constant 9.99999993E-9 : f32
    %24 = vector.broadcast %cst_11 : f32 to vector<16x1xf32>
    %25 = arith.addf %19, %24 : vector<16x1xf32>
    %26 = math.rsqrt %25 : vector<16x1xf32>
    %27 = vector.broadcast %26 : vector<16x1xf32> to vector<16x32xf32>
    %28 = arith.mulf %23, %27 : vector<16x32xf32>
    %29 = vector.broadcast %3 : vector<1x32xf32> to vector<16x32xf32>
    %30 = arith.addf %28, %29 : vector<16x32xf32>
    %31 = vector.shape_cast %30 : vector<16x32xf32> to vector<2x8x32xf32>
    %cst_12 = arith.constant dense<0.000000e+00> : vector<2x8xf32>
    %32 = vector.multi_reduction <add>, %31, %cst_12 [2] : vector<2x8x32xf32> to vector<2x8xf32>
    %33 = vector.shape_cast %32 : vector<2x8xf32> to vector<2x8x1xf32>
    %34 = math.absf %33 : vector<2x8x1xf32>
    %cst_13 = arith.constant 0.000000e+00 : f32
    %35 = vector.broadcast %cst_13 : f32 to vector<2x8x1xf32>
    %36 = arith.cmpf ogt, %34, %35 : vector<2x8x1xf32>
    "tpu.trace_start"() <{level = 10 : i32, message = "bqd,bkd->bqk"}> : () -> ()
    %cst_14 = arith.constant dense<0.000000e+00> : vector<2x1x8xf32>
    %37 = tpu.matmul %8, %31, %cst_14 {dimension_numbers = #tpu.dot_dimension_numbers<[2], [2], [1], [1], [0, 0, 0, 1, 1, 1], [0], [0]>} : vector<2x1x32xf32>, vector<2x8x32xf32>, vector<2x1x8xf32> -> vector<2x1x8xf32>
    "tpu.trace_stop"() : () -> ()
    %38 = math.absf %37 : vector<2x1x8xf32>
    %cst_15 = arith.constant 0.000000e+00 : f32
    %39 = vector.broadcast %cst_15 : f32 to vector<2x1x8xf32>
    %40 = arith.cmpf ogt, %38, %39 : vector<2x1x8xf32>
    %41 = vector.broadcast %7 : vector<1x8x8xi1> to vector<2x8x8xi1>
    %42 = vector.broadcast %40 : vector<2x1x8xi1> to vector<2x8x8xi1>
    %43 = arith.andi %41, %42 : vector<2x8x8xi1>
    %44 = arith.extui %36 : vector<2x8x1xi1> to vector<2x8x1xi32>
    %45 = arith.sitofp %44 : vector<2x8x1xi32> to vector<2x8x1xf32>
    %c0_16 = arith.constant 0 : index
    %c0_17 = arith.constant 0 : index
    %c0_18 = arith.constant 0 : index
    %46 = vector.load %arg2[%c0_16, %c0_17, %c0_18] : memref<2x32x96xf32, #tpu.memory_space<vmem>>, vector<1x32x96xf32>
    %47 = vector.shape_cast %46 : vector<1x32x96xf32> to vector<32x96xf32>
    %cst_19 = arith.constant dense<0.000000e+00> : vector<16x96xf32>
    %48 = tpu.matmul %30, %47, %cst_19 {dimension_numbers = #tpu.dot_dimension_numbers<[1], [0], [0], [1], [0, 0, 1, 1], [], []>} : vector<16x32xf32>, vector<32x96xf32>, vector<16x96xf32> -> vector<16x96xf32>
    %c0_20 = arith.constant 0 : index
    %c0_21 = arith.constant 0 : index
    %c0_22 = arith.constant 0 : index
    %49 = vector.load %arg3[%c0_20, %c0_21, %c0_22] : memref<2x1x96xf32, #tpu.memory_space<vmem>>, vector<1x1x96xf32>
    %50 = vector.shape_cast %49 : vector<1x1x96xf32> to vector<1x96xf32>
    %51 = vector.broadcast %50 : vector<1x96xf32> to vector<16x96xf32>
    %52 = arith.addf %48, %51 : vector<16x96xf32>
    %cst_23 = arith.constant 0.000000e+00 : f32
    %53 = vector.broadcast %cst_23 : f32 to vector<16x96xf32>
    %54 = arith.maximumf %52, %53 : vector<16x96xf32>
    %55 = vector.shape_cast %54 : vector<16x96xf32> to vector<2x8x96xf32>
    %56 = vector.extract_strided_slice %55 {offsets = [0, 0, 0], sizes = [2, 8, 16], strides = [1, 1, 1]} : vector<2x8x96xf32> to vector<2x8x16xf32>
    %57 = vector.extract_strided_slice %55 {offsets = [0, 0, 32], sizes = [2, 8, 16], strides = [1, 1, 1]} : vector<2x8x96xf32> to vector<2x8x16xf32>
    %58 = vector.extract_strided_slice %55 {offsets = [0, 0, 64], sizes = [2, 8, 16], strides = [1, 1, 1]} : vector<2x8x96xf32> to vector<2x8x16xf32>
    "tpu.trace_start"() <{level = 10 : i32, message = "bqd,bkd->bqk"}> : () -> ()
    %cst_24 = arith.constant dense<0.000000e+00> : vector<2x8x8xf32>
    %59 = tpu.matmul %56, %57, %cst_24 {dimension_numbers = #tpu.dot_dimension_numbers<[2], [2], [1], [1], [0, 0, 0, 1, 1, 1], [0], [0]>} : vector<2x8x16xf32>, vector<2x8x16xf32>, vector<2x8x8xf32> -> vector<2x8x8xf32>
    "tpu.trace_stop"() : () -> ()
    %cst_25 = arith.constant 2.500000e-01 : f32
    %60 = vector.broadcast %cst_25 : f32 to vector<2x8x8xf32>
    %61 = arith.mulf %59, %60 : vector<2x8x8xf32>
    %cst_26 = arith.constant -4.2949673E+9 : f32
    %62 = vector.broadcast %cst_26 : f32 to vector<2x8x8xf32>
    %63 = arith.select %43, %61, %62 : vector<2x8x8xi1>, vector<2x8x8xf32>
    %cst_27 = arith.constant dense<0xFF800000> : vector<2x8xf32>
    %64 = vector.multi_reduction <maximumf>, %63, %cst_27 [2] : vector<2x8x8xf32> to vector<2x8xf32>
    %65 = vector.shape_cast %64 : vector<2x8xf32> to vector<2x8x1xf32>
    %66 = vector.broadcast %65 : vector<2x8x1xf32> to vector<2x8x8xf32>
    %67 = arith.subf %63, %66 : vector<2x8x8xf32>
    %68 = math.exp %67 : vector<2x8x8xf32>
    %cst_28 = arith.constant dense<0.000000e+00> : vector<2x8xf32>
    %69 = vector.multi_reduction <add>, %68, %cst_28 [2] : vector<2x8x8xf32> to vector<2x8xf32>
    %70 = vector.shape_cast %69 : vector<2x8xf32> to vector<2x8x1xf32>
    %71 = tpu.reciprocal %70 {approx = true} : vector<2x8x1xf32> -> vector<2x8x1xf32>
    %72 = vector.broadcast %71 : vector<2x8x1xf32> to vector<2x8x8xf32>
    %73 = arith.mulf %68, %72 : vector<2x8x8xf32>
    %74 = vector.broadcast %45 : vector<2x8x1xf32> to vector<2x8x8xf32>
    %75 = arith.mulf %73, %74 : vector<2x8x8xf32>
    "tpu.trace_start"() <{level = 10 : i32, message = "bqk,bkd->bqd"}> : () -> ()
    %cst_29 = arith.constant dense<0.000000e+00> : vector<2x8x16xf32>
    %76 = tpu.matmul %75, %58, %cst_29 {dimension_numbers = #tpu.dot_dimension_numbers<[2], [1], [1], [2], [0, 0, 0, 1, 1, 2], [0], [0]>} : vector<2x8x8xf32>, vector<2x8x16xf32>, vector<2x8x16xf32> -> vector<2x8x16xf32>
    "tpu.trace_stop"() : () -> ()
    %77 = vector.extract_strided_slice %55 {offsets = [0, 0, 16], sizes = [2, 8, 16], strides = [1, 1, 1]} : vector<2x8x96xf32> to vector<2x8x16xf32>
    %78 = vector.extract_strided_slice %55 {offsets = [0, 0, 48], sizes = [2, 8, 16], strides = [1, 1, 1]} : vector<2x8x96xf32> to vector<2x8x16xf32>
    %79 = vector.extract_strided_slice %55 {offsets = [0, 0, 80], sizes = [2, 8, 16], strides = [1, 1, 1]} : vector<2x8x96xf32> to vector<2x8x16xf32>
    "tpu.trace_start"() <{level = 10 : i32, message = "bqd,bkd->bqk"}> : () -> ()
    %cst_30 = arith.constant dense<0.000000e+00> : vector<2x8x8xf32>
    %80 = tpu.matmul %77, %78, %cst_30 {dimension_numbers = #tpu.dot_dimension_numbers<[2], [2], [1], [1], [0, 0, 0, 1, 1, 1], [0], [0]>} : vector<2x8x16xf32>, vector<2x8x16xf32>, vector<2x8x8xf32> -> vector<2x8x8xf32>
    "tpu.trace_stop"() : () -> ()
    %cst_31 = arith.constant 2.500000e-01 : f32
    %81 = vector.broadcast %cst_31 : f32 to vector<2x8x8xf32>
    %82 = arith.mulf %80, %81 : vector<2x8x8xf32>
    %cst_32 = arith.constant -4.2949673E+9 : f32
    %83 = vector.broadcast %cst_32 : f32 to vector<2x8x8xf32>
    %84 = arith.select %43, %82, %83 : vector<2x8x8xi1>, vector<2x8x8xf32>
    %cst_33 = arith.constant dense<0xFF800000> : vector<2x8xf32>
    %85 = vector.multi_reduction <maximumf>, %84, %cst_33 [2] : vector<2x8x8xf32> to vector<2x8xf32>
    %86 = vector.shape_cast %85 : vector<2x8xf32> to vector<2x8x1xf32>
    %87 = vector.broadcast %86 : vector<2x8x1xf32> to vector<2x8x8xf32>
    %88 = arith.subf %84, %87 : vector<2x8x8xf32>
    %89 = math.exp %88 : vector<2x8x8xf32>
    %cst_34 = arith.constant dense<0.000000e+00> : vector<2x8xf32>
    %90 = vector.multi_reduction <add>, %89, %cst_34 [2] : vector<2x8x8xf32> to vector<2x8xf32>
    %91 = vector.shape_cast %90 : vector<2x8xf32> to vector<2x8x1xf32>
    %92 = tpu.reciprocal %91 {approx = true} : vector<2x8x1xf32> -> vector<2x8x1xf32>
    %93 = vector.broadcast %92 : vector<2x8x1xf32> to vector<2x8x8xf32>
    %94 = arith.mulf %89, %93 : vector<2x8x8xf32>
    %95 = vector.broadcast %45 : vector<2x8x1xf32> to vector<2x8x8xf32>
    %96 = arith.mulf %94, %95 : vector<2x8x8xf32>
    "tpu.trace_start"() <{level = 10 : i32, message = "bqk,bkd->bqd"}> : () -> ()
    %cst_35 = arith.constant dense<0.000000e+00> : vector<2x8x16xf32>
    %97 = tpu.matmul %96, %79, %cst_35 {dimension_numbers = #tpu.dot_dimension_numbers<[2], [1], [1], [2], [0, 0, 0, 1, 1, 2], [0], [0]>} : vector<2x8x8xf32>, vector<2x8x16xf32>, vector<2x8x16xf32> -> vector<2x8x16xf32>
    "tpu.trace_stop"() : () -> ()
    %98 = tpu.concatenate %76, %97 in 2 : vector<2x8x16xf32>, vector<2x8x16xf32> -> vector<2x8x32xf32>
    %99 = vector.shape_cast %98 : vector<2x8x32xf32> to vector<16x32xf32>
    %100 = arith.addf %99, %30 : vector<16x32xf32>
    %c0_36 = arith.constant 0 : index
    %c0_37 = arith.constant 0 : index
    %c0_38 = arith.constant 0 : index
    %101 = vector.load %arg4[%c0_36, %c0_37, %c0_38] : memref<2x32x32xf32, #tpu.memory_space<vmem>>, vector<1x32x32xf32>
    %102 = vector.shape_cast %101 : vector<1x32x32xf32> to vector<32x32xf32>
    %cst_39 = arith.constant dense<0.000000e+00> : vector<16x32xf32>
    %103 = tpu.matmul %100, %102, %cst_39 {dimension_numbers = #tpu.dot_dimension_numbers<[1], [0], [0], [1], [0, 0, 1, 1], [], []>} : vector<16x32xf32>, vector<32x32xf32>, vector<16x32xf32> -> vector<16x32xf32>
    %c0_40 = arith.constant 0 : index
    %c0_41 = arith.constant 0 : index
    %c0_42 = arith.constant 0 : index
    %104 = vector.load %arg5[%c0_40, %c0_41, %c0_42] : memref<2x1x32xf32, #tpu.memory_space<vmem>>, vector<1x1x32xf32>
    %105 = vector.shape_cast %104 : vector<1x1x32xf32> to vector<1x32xf32>
    %106 = vector.broadcast %105 : vector<1x32xf32> to vector<16x32xf32>
    %107 = arith.addf %103, %106 : vector<16x32xf32>
    %cst_43 = arith.constant 0.000000e+00 : f32
    %108 = vector.broadcast %cst_43 : f32 to vector<16x32xf32>
    %109 = arith.maximumf %107, %108 : vector<16x32xf32>
    %c0_44 = arith.constant 0 : index
    %c0_45 = arith.constant 0 : index
    %c0_46 = arith.constant 0 : index
    %110 = vector.load %arg6[%c0_44, %c0_45, %c0_46] : memref<2x32x32xf32, #tpu.memory_space<vmem>>, vector<1x32x32xf32>
    %111 = vector.shape_cast %110 : vector<1x32x32xf32> to vector<32x32xf32>
    %cst_47 = arith.constant dense<0.000000e+00> : vector<16x32xf32>
    %112 = tpu.matmul %109, %111, %cst_47 {dimension_numbers = #tpu.dot_dimension_numbers<[1], [0], [0], [1], [0, 0, 1, 1], [], []>} : vector<16x32xf32>, vector<32x32xf32>, vector<16x32xf32> -> vector<16x32xf32>
    %c0_48 = arith.constant 0 : index
    %c0_49 = arith.constant 0 : index
    %c0_50 = arith.constant 0 : index
    %113 = vector.load %arg7[%c0_48, %c0_49, %c0_50] : memref<2x1x32xf32, #tpu.memory_space<vmem>>, vector<1x1x32xf32>
    %114 = vector.shape_cast %113 : vector<1x1x32xf32> to vector<1x32xf32>
    %115 = vector.broadcast %114 : vector<1x32xf32> to vector<16x32xf32>
    %116 = arith.addf %112, %115 : vector<16x32xf32>
    %117 = arith.addf %116, %100 : vector<16x32xf32>
    %118 = vector.broadcast %1 : vector<16x1xf32> to vector<16x32xf32>
    %119 = arith.mulf %117, %118 : vector<16x32xf32>
    %cst_51 = arith.constant dense<0.000000e+00> : vector<16xf32>
    %120 = vector.multi_reduction <add>, %119, %cst_51 [1] : vector<16x32xf32> to vector<16xf32>
    %121 = vector.shape_cast %120 : vector<16xf32> to vector<16x1xf32>
    %cst_52 = arith.constant 3.200000e+01 : f32
    %122 = vector.broadcast %cst_52 : f32 to vector<16x1xf32>
    %123 = arith.divf %121, %122 : vector<16x1xf32>
    %124 = vector.broadcast %123 : vector<16x1xf32> to vector<16x32xf32>
    %125 = arith.subf %119, %124 : vector<16x32xf32>
    %126 = arith.mulf %125, %125 : vector<16x32xf32>
    %cst_53 = arith.constant dense<0.000000e+00> : vector<16xf32>
    %127 = vector.multi_reduction <add>, %126, %cst_53 [1] : vector<16x32xf32> to vector<16xf32>
    %128 = vector.shape_cast %127 : vector<16xf32> to vector<16x1xf32>
    %cst_54 = arith.constant 3.200000e+01 : f32
    %129 = vector.broadcast %cst_54 : f32 to vector<16x1xf32>
    %130 = arith.divf %128, %129 : vector<16x1xf32>
    %131 = vector.broadcast %123 : vector<16x1xf32> to vector<16x32xf32>
    %132 = arith.subf %119, %131 : vector<16x32xf32>
    %133 = vector.broadcast %2 : vector<1x32xf32> to vector<16x32xf32>
    %134 = arith.mulf %133, %132 : vector<16x32xf32>
    %cst_55 = arith.constant 9.99999993E-9 : f32
    %135 = vector.broadcast %cst_55 : f32 to vector<16x1xf32>
    %136 = arith.addf %130, %135 : vector<16x1xf32>
    %137 = math.rsqrt %136 : vector<16x1xf32>
    %138 = vector.broadcast %137 : vector<16x1xf32> to vector<16x32xf32>
    %139 = arith.mulf %134, %138 : vector<16x32xf32>
    %140 = vector.broadcast %3 : vector<1x32xf32> to vector<16x32xf32>
    %141 = arith.addf %139, %140 : vector<16x32xf32>
    %142 = vector.shape_cast %141 : vector<16x32xf32> to vector<2x8x32xf32>
    %cst_56 = arith.constant dense<0.000000e+00> : vector<2x8xf32>
    %143 = vector.multi_reduction <add>, %142, %cst_56 [2] : vector<2x8x32xf32> to vector<2x8xf32>
    %144 = vector.shape_cast %143 : vector<2x8xf32> to vector<2x8x1xf32>
    %145 = math.absf %144 : vector<2x8x1xf32>
    %cst_57 = arith.constant 0.000000e+00 : f32
    %146 = vector.broadcast %cst_57 : f32 to vector<2x8x1xf32>
    %147 = arith.cmpf ogt, %145, %146 : vector<2x8x1xf32>
    "tpu.trace_start"() <{level = 10 : i32, message = "bqd,bkd->bqk"}> : () -> ()
    %cst_58 = arith.constant dense<0.000000e+00> : vector<2x1x8xf32>
    %148 = tpu.matmul %8, %142, %cst_58 {dimension_numbers = #tpu.dot_dimension_numbers<[2], [2], [1], [1], [0, 0, 0, 1, 1, 1], [0], [0]>} : vector<2x1x32xf32>, vector<2x8x32xf32>, vector<2x1x8xf32> -> vector<2x1x8xf32>
    "tpu.trace_stop"() : () -> ()
    %149 = math.absf %148 : vector<2x1x8xf32>
    %cst_59 = arith.constant 0.000000e+00 : f32
    %150 = vector.broadcast %cst_59 : f32 to vector<2x1x8xf32>
    %151 = arith.cmpf ogt, %149, %150 : vector<2x1x8xf32>
    %152 = vector.broadcast %7 : vector<1x8x8xi1> to vector<2x8x8xi1>
    %153 = vector.broadcast %151 : vector<2x1x8xi1> to vector<2x8x8xi1>
    %154 = arith.andi %152, %153 : vector<2x8x8xi1>
    %155 = arith.extui %147 : vector<2x8x1xi1> to vector<2x8x1xi32>
    %156 = arith.sitofp %155 : vector<2x8x1xi32> to vector<2x8x1xf32>
    %c1 = arith.constant 1 : index
    %c0_60 = arith.constant 0 : index
    %c0_61 = arith.constant 0 : index
    %157 = vector.load %arg2[%c1, %c0_60, %c0_61] : memref<2x32x96xf32, #tpu.memory_space<vmem>>, vector<1x32x96xf32>
    %158 = vector.shape_cast %157 : vector<1x32x96xf32> to vector<32x96xf32>
    %cst_62 = arith.constant dense<0.000000e+00> : vector<16x96xf32>
    %159 = tpu.matmul %141, %158, %cst_62 {dimension_numbers = #tpu.dot_dimension_numbers<[1], [0], [0], [1], [0, 0, 1, 1], [], []>} : vector<16x32xf32>, vector<32x96xf32>, vector<16x96xf32> -> vector<16x96xf32>
    %c1_63 = arith.constant 1 : index
    %c0_64 = arith.constant 0 : index
    %c0_65 = arith.constant 0 : index
    %160 = vector.load %arg3[%c1_63, %c0_64, %c0_65] : memref<2x1x96xf32, #tpu.memory_space<vmem>>, vector<1x1x96xf32>
    %161 = vector.shape_cast %160 : vector<1x1x96xf32> to vector<1x96xf32>
    %162 = vector.broadcast %161 : vector<1x96xf32> to vector<16x96xf32>
    %163 = arith.addf %159, %162 : vector<16x96xf32>
    %cst_66 = arith.constant 0.000000e+00 : f32
    %164 = vector.broadcast %cst_66 : f32 to vector<16x96xf32>
    %165 = arith.maximumf %163, %164 : vector<16x96xf32>
    %166 = vector.shape_cast %165 : vector<16x96xf32> to vector<2x8x96xf32>
    %167 = vector.extract_strided_slice %166 {offsets = [0, 0, 0], sizes = [2, 8, 16], strides = [1, 1, 1]} : vector<2x8x96xf32> to vector<2x8x16xf32>
    %168 = vector.extract_strided_slice %166 {offsets = [0, 0, 32], sizes = [2, 8, 16], strides = [1, 1, 1]} : vector<2x8x96xf32> to vector<2x8x16xf32>
    %169 = vector.extract_strided_slice %166 {offsets = [0, 0, 64], sizes = [2, 8, 16], strides = [1, 1, 1]} : vector<2x8x96xf32> to vector<2x8x16xf32>
    "tpu.trace_start"() <{level = 10 : i32, message = "bqd,bkd->bqk"}> : () -> ()
    %cst_67 = arith.constant dense<0.000000e+00> : vector<2x8x8xf32>
    %170 = tpu.matmul %167, %168, %cst_67 {dimension_numbers = #tpu.dot_dimension_numbers<[2], [2], [1], [1], [0, 0, 0, 1, 1, 1], [0], [0]>} : vector<2x8x16xf32>, vector<2x8x16xf32>, vector<2x8x8xf32> -> vector<2x8x8xf32>
    "tpu.trace_stop"() : () -> ()
    %cst_68 = arith.constant 2.500000e-01 : f32
    %171 = vector.broadcast %cst_68 : f32 to vector<2x8x8xf32>
    %172 = arith.mulf %170, %171 : vector<2x8x8xf32>
    %cst_69 = arith.constant -4.2949673E+9 : f32
    %173 = vector.broadcast %cst_69 : f32 to vector<2x8x8xf32>
    %174 = arith.select %154, %172, %173 : vector<2x8x8xi1>, vector<2x8x8xf32>
    %cst_70 = arith.constant dense<0xFF800000> : vector<2x8xf32>
    %175 = vector.multi_reduction <maximumf>, %174, %cst_70 [2] : vector<2x8x8xf32> to vector<2x8xf32>
    %176 = vector.shape_cast %175 : vector<2x8xf32> to vector<2x8x1xf32>
    %177 = vector.broadcast %176 : vector<2x8x1xf32> to vector<2x8x8xf32>
    %178 = arith.subf %174, %177 : vector<2x8x8xf32>
    %179 = math.exp %178 : vector<2x8x8xf32>
    %cst_71 = arith.constant dense<0.000000e+00> : vector<2x8xf32>
    %180 = vector.multi_reduction <add>, %179, %cst_71 [2] : vector<2x8x8xf32> to vector<2x8xf32>
    %181 = vector.shape_cast %180 : vector<2x8xf32> to vector<2x8x1xf32>
    %182 = tpu.reciprocal %181 {approx = true} : vector<2x8x1xf32> -> vector<2x8x1xf32>
    %183 = vector.broadcast %182 : vector<2x8x1xf32> to vector<2x8x8xf32>
    %184 = arith.mulf %179, %183 : vector<2x8x8xf32>
    %185 = vector.broadcast %156 : vector<2x8x1xf32> to vector<2x8x8xf32>
    %186 = arith.mulf %184, %185 : vector<2x8x8xf32>
    "tpu.trace_start"() <{level = 10 : i32, message = "bqk,bkd->bqd"}> : () -> ()
    %cst_72 = arith.constant dense<0.000000e+00> : vector<2x8x16xf32>
    %187 = tpu.matmul %186, %169, %cst_72 {dimension_numbers = #tpu.dot_dimension_numbers<[2], [1], [1], [2], [0, 0, 0, 1, 1, 2], [0], [0]>} : vector<2x8x8xf32>, vector<2x8x16xf32>, vector<2x8x16xf32> -> vector<2x8x16xf32>
    "tpu.trace_stop"() : () -> ()
    %188 = vector.extract_strided_slice %166 {offsets = [0, 0, 16], sizes = [2, 8, 16], strides = [1, 1, 1]} : vector<2x8x96xf32> to vector<2x8x16xf32>
    %189 = vector.extract_strided_slice %166 {offsets = [0, 0, 48], sizes = [2, 8, 16], strides = [1, 1, 1]} : vector<2x8x96xf32> to vector<2x8x16xf32>
    %190 = vector.extract_strided_slice %166 {offsets = [0, 0, 80], sizes = [2, 8, 16], strides = [1, 1, 1]} : vector<2x8x96xf32> to vector<2x8x16xf32>
    "tpu.trace_start"() <{level = 10 : i32, message = "bqd,bkd->bqk"}> : () -> ()
    %cst_73 = arith.constant dense<0.000000e+00> : vector<2x8x8xf32>
    %191 = tpu.matmul %188, %189, %cst_73 {dimension_numbers = #tpu.dot_dimension_numbers<[2], [2], [1], [1], [0, 0, 0, 1, 1, 1], [0], [0]>} : vector<2x8x16xf32>, vector<2x8x16xf32>, vector<2x8x8xf32> -> vector<2x8x8xf32>
    "tpu.trace_stop"() : () -> ()
    %cst_74 = arith.constant 2.500000e-01 : f32
    %192 = vector.broadcast %cst_74 : f32 to vector<2x8x8xf32>
    %193 = arith.mulf %191, %192 : vector<2x8x8xf32>
    %cst_75 = arith.constant -4.2949673E+9 : f32
    %194 = vector.broadcast %cst_75 : f32 to vector<2x8x8xf32>
    %195 = arith.select %154, %193, %194 : vector<2x8x8xi1>, vector<2x8x8xf32>
    %cst_76 = arith.constant dense<0xFF800000> : vector<2x8xf32>
    %196 = vector.multi_reduction <maximumf>, %195, %cst_76 [2] : vector<2x8x8xf32> to vector<2x8xf32>
    %197 = vector.shape_cast %196 : vector<2x8xf32> to vector<2x8x1xf32>
    %198 = vector.broadcast %197 : vector<2x8x1xf32> to vector<2x8x8xf32>
    %199 = arith.subf %195, %198 : vector<2x8x8xf32>
    %200 = math.exp %199 : vector<2x8x8xf32>
    %cst_77 = arith.constant dense<0.000000e+00> : vector<2x8xf32>
    %201 = vector.multi_reduction <add>, %200, %cst_77 [2] : vector<2x8x8xf32> to vector<2x8xf32>
    %202 = vector.shape_cast %201 : vector<2x8xf32> to vector<2x8x1xf32>
    %203 = tpu.reciprocal %202 {approx = true} : vector<2x8x1xf32> -> vector<2x8x1xf32>
    %204 = vector.broadcast %203 : vector<2x8x1xf32> to vector<2x8x8xf32>
    %205 = arith.mulf %200, %204 : vector<2x8x8xf32>
    %206 = vector.broadcast %156 : vector<2x8x1xf32> to vector<2x8x8xf32>
    %207 = arith.mulf %205, %206 : vector<2x8x8xf32>
    "tpu.trace_start"() <{level = 10 : i32, message = "bqk,bkd->bqd"}> : () -> ()
    %cst_78 = arith.constant dense<0.000000e+00> : vector<2x8x16xf32>
    %208 = tpu.matmul %207, %190, %cst_78 {dimension_numbers = #tpu.dot_dimension_numbers<[2], [1], [1], [2], [0, 0, 0, 1, 1, 2], [0], [0]>} : vector<2x8x8xf32>, vector<2x8x16xf32>, vector<2x8x16xf32> -> vector<2x8x16xf32>
    "tpu.trace_stop"() : () -> ()
    %209 = tpu.concatenate %187, %208 in 2 : vector<2x8x16xf32>, vector<2x8x16xf32> -> vector<2x8x32xf32>
    %210 = vector.shape_cast %209 : vector<2x8x32xf32> to vector<16x32xf32>
    %211 = arith.addf %210, %141 : vector<16x32xf32>
    %c1_79 = arith.constant 1 : index
    %c0_80 = arith.constant 0 : index
    %c0_81 = arith.constant 0 : index
    %212 = vector.load %arg4[%c1_79, %c0_80, %c0_81] : memref<2x32x32xf32, #tpu.memory_space<vmem>>, vector<1x32x32xf32>
    %213 = vector.shape_cast %212 : vector<1x32x32xf32> to vector<32x32xf32>
    %cst_82 = arith.constant dense<0.000000e+00> : vector<16x32xf32>
    %214 = tpu.matmul %211, %213, %cst_82 {dimension_numbers = #tpu.dot_dimension_numbers<[1], [0], [0], [1], [0, 0, 1, 1], [], []>} : vector<16x32xf32>, vector<32x32xf32>, vector<16x32xf32> -> vector<16x32xf32>
    %c1_83 = arith.constant 1 : index
    %c0_84 = arith.constant 0 : index
    %c0_85 = arith.constant 0 : index
    %215 = vector.load %arg5[%c1_83, %c0_84, %c0_85] : memref<2x1x32xf32, #tpu.memory_space<vmem>>, vector<1x1x32xf32>
    %216 = vector.shape_cast %215 : vector<1x1x32xf32> to vector<1x32xf32>
    %217 = vector.broadcast %216 : vector<1x32xf32> to vector<16x32xf32>
    %218 = arith.addf %214, %217 : vector<16x32xf32>
    %cst_86 = arith.constant 0.000000e+00 : f32
    %219 = vector.broadcast %cst_86 : f32 to vector<16x32xf32>
    %220 = arith.maximumf %218, %219 : vector<16x32xf32>
    %c1_87 = arith.constant 1 : index
    %c0_88 = arith.constant 0 : index
    %c0_89 = arith.constant 0 : index
    %221 = vector.load %arg6[%c1_87, %c0_88, %c0_89] : memref<2x32x32xf32, #tpu.memory_space<vmem>>, vector<1x32x32xf32>
    %222 = vector.shape_cast %221 : vector<1x32x32xf32> to vector<32x32xf32>
    %cst_90 = arith.constant dense<0.000000e+00> : vector<16x32xf32>
    %223 = tpu.matmul %220, %222, %cst_90 {dimension_numbers = #tpu.dot_dimension_numbers<[1], [0], [0], [1], [0, 0, 1, 1], [], []>} : vector<16x32xf32>, vector<32x32xf32>, vector<16x32xf32> -> vector<16x32xf32>
    %c1_91 = arith.constant 1 : index
    %c0_92 = arith.constant 0 : index
    %c0_93 = arith.constant 0 : index
    %224 = vector.load %arg7[%c1_91, %c0_92, %c0_93] : memref<2x1x32xf32, #tpu.memory_space<vmem>>, vector<1x1x32xf32>
    %225 = vector.shape_cast %224 : vector<1x1x32xf32> to vector<1x32xf32>
    %226 = vector.broadcast %225 : vector<1x32xf32> to vector<16x32xf32>
    %227 = arith.addf %223, %226 : vector<16x32xf32>
    %228 = arith.addf %227, %211 : vector<16x32xf32>
    %229 = vector.broadcast %1 : vector<16x1xf32> to vector<16x32xf32>
    %230 = arith.mulf %228, %229 : vector<16x32xf32>
    %cst_94 = arith.constant dense<0.000000e+00> : vector<16xf32>
    %231 = vector.multi_reduction <add>, %230, %cst_94 [1] : vector<16x32xf32> to vector<16xf32>
    %232 = vector.shape_cast %231 : vector<16xf32> to vector<16x1xf32>
    %cst_95 = arith.constant 3.200000e+01 : f32
    %233 = vector.broadcast %cst_95 : f32 to vector<16x1xf32>
    %234 = arith.divf %232, %233 : vector<16x1xf32>
    %235 = vector.broadcast %234 : vector<16x1xf32> to vector<16x32xf32>
    %236 = arith.subf %230, %235 : vector<16x32xf32>
    %237 = arith.mulf %236, %236 : vector<16x32xf32>
    %cst_96 = arith.constant dense<0.000000e+00> : vector<16xf32>
    %238 = vector.multi_reduction <add>, %237, %cst_96 [1] : vector<16x32xf32> to vector<16xf32>
    %239 = vector.shape_cast %238 : vector<16xf32> to vector<16x1xf32>
    %cst_97 = arith.constant 3.200000e+01 : f32
    %240 = vector.broadcast %cst_97 : f32 to vector<16x1xf32>
    %241 = arith.divf %239, %240 : vector<16x1xf32>
    %242 = vector.broadcast %234 : vector<16x1xf32> to vector<16x32xf32>
    %243 = arith.subf %230, %242 : vector<16x32xf32>
    %244 = vector.broadcast %2 : vector<1x32xf32> to vector<16x32xf32>
    %245 = arith.mulf %244, %243 : vector<16x32xf32>
    %cst_98 = arith.constant 9.99999993E-9 : f32
    %246 = vector.broadcast %cst_98 : f32 to vector<16x1xf32>
    %247 = arith.addf %241, %246 : vector<16x1xf32>
    %248 = math.rsqrt %247 : vector<16x1xf32>
    %249 = vector.broadcast %248 : vector<16x1xf32> to vector<16x32xf32>
    %250 = arith.mulf %245, %249 : vector<16x32xf32>
    %251 = vector.broadcast %3 : vector<1x32xf32> to vector<16x32xf32>
    %252 = arith.addf %250, %251 : vector<16x32xf32>
    %253 = tpu.concatenate %73, %94, %184, %205 in 2 : vector<2x8x8xf32>, vector<2x8x8xf32>, vector<2x8x8xf32>, vector<2x8x8xf32> -> vector<2x8x32xf32>
    %c0_99 = arith.constant 0 : index
    %c0_100 = arith.constant 0 : index
    %c0_101 = arith.constant 0 : index
    %254 = vector.load %arg15[%c0_99, %c0_100, %c0_101] : memref<2x8x32xf32, #tpu.memory_space<vmem>>, vector<2x8x32xf32>
    tpu.vector_store %arg15[%c0_99, %c0_100, %c0_101], %253 {strides = array<i32>} : memref<2x8x32xf32, #tpu.memory_space<vmem>>, vector<2x8x32xf32>,
    %c0_102 = arith.constant 0 : index
    %c0_103 = arith.constant 0 : index
    %255 = vector.load %arg10[%c0_102, %c0_103] : memref<16x32xf32, #tpu.memory_space<vmem>>, vector<16x32xf32>
    %c0_104 = arith.constant 0 : index
    %c0_105 = arith.constant 0 : index
    %256 = vector.load %arg11[%c0_104, %c0_105] : memref<16x32xf32, #tpu.memory_space<vmem>>, vector<16x32xf32>
    %c0_106 = arith.constant 0 : index
    %c0_107 = arith.constant 0 : index
    %257 = vector.load %arg12[%c0_106, %c0_107] : memref<16x1xf32, #tpu.memory_space<vmem>>, vector<16x1xf32>
    %258 = arith.mulf %255, %252 : vector<16x32xf32>
    %cst_108 = arith.constant dense<0.000000e+00> : vector<16xf32>
    %259 = vector.multi_reduction <add>, %258, %cst_108 [1] : vector<16x32xf32> to vector<16xf32>
    %260 = vector.shape_cast %259 : vector<16xf32> to vector<16x1xf32>
    %261 = arith.mulf %256, %252 : vector<16x32xf32>
    %cst_109 = arith.constant dense<0.000000e+00> : vector<16xf32>
    %262 = vector.multi_reduction <add>, %261, %cst_109 [1] : vector<16x32xf32> to vector<16xf32>
    %263 = vector.shape_cast %262 : vector<16xf32> to vector<16x1xf32>
    %264 = arith.negf %260 : vector<16x1xf32>
    %265 = math.exp %264 : vector<16x1xf32>
    %cst_110 = arith.constant 1.000000e+00 : f32
    %266 = vector.broadcast %cst_110 : f32 to vector<16x1xf32>
    %267 = arith.addf %266, %265 : vector<16x1xf32>
    %268 = arith.divf %266, %267 : vector<16x1xf32>
    %269 = arith.negf %263 : vector<16x1xf32>
    %270 = math.exp %269 : vector<16x1xf32>
    %cst_111 = arith.constant 1.000000e+00 : f32
    %271 = vector.broadcast %cst_111 : f32 to vector<16x1xf32>
    %272 = arith.addf %271, %270 : vector<16x1xf32>
    %273 = arith.divf %271, %272 : vector<16x1xf32>
    %274 = vector.shape_cast %257 : vector<16x1xf32> to vector<1x16x1xf32>
    %cst_112 = arith.constant dense<0.000000e+00> : vector<1xf32>
    %275 = vector.multi_reduction <add>, %274, %cst_112 [1, 2] : vector<1x16x1xf32> to vector<1xf32>
    %276 = vector.shape_cast %275 : vector<1xf32> to vector<1x1x1xf32>
    %277 = vector.extract %276[0, 0, 0] : f32 from vector<1x1x1xf32>
    %278 = vector.broadcast %277 : f32 to vector<1x1xf32>
    %cst_113 = arith.constant 1.000000e-24 : f32
    %279 = vector.broadcast %cst_113 : f32 to vector<16x1xf32>
    %280 = arith.addf %268, %279 : vector<16x1xf32>
    %281 = math.log %280 : vector<16x1xf32>
    %282 = arith.mulf %281, %257 : vector<16x1xf32>
    %cst_114 = arith.constant 0.000000e+00 : f32
    %283 = vector.broadcast %cst_114 : f32 to vector<16x1xf32>
    %284 = arith.subf %283, %282 : vector<16x1xf32>
    %cst_115 = arith.constant 1.000000e+00 : f32
    %285 = vector.broadcast %cst_115 : f32 to vector<16x1xf32>
    %286 = arith.subf %285, %273 : vector<16x1xf32>
    %cst_116 = arith.constant 1.000000e-24 : f32
    %287 = vector.broadcast %cst_116 : f32 to vector<16x1xf32>
    %288 = arith.addf %286, %287 : vector<16x1xf32>
    %289 = math.log %288 : vector<16x1xf32>
    %290 = arith.mulf %289, %257 : vector<16x1xf32>
    %291 = arith.subf %284, %290 : vector<16x1xf32>
    %292 = vector.shape_cast %291 : vector<16x1xf32> to vector<1x16x1xf32>
    %cst_117 = arith.constant dense<0.000000e+00> : vector<1xf32>
    %293 = vector.multi_reduction <add>, %292, %cst_117 [1, 2] : vector<1x16x1xf32> to vector<1xf32>
    %294 = vector.shape_cast %293 : vector<1xf32> to vector<1x1x1xf32>
    %295 = vector.extract %294[0, 0, 0] : f32 from vector<1x1x1xf32>
    %296 = vector.broadcast %295 : f32 to vector<1x1xf32>
    %297 = arith.divf %296, %278 : vector<1x1xf32>
    %c0_118 = arith.constant 0 : index
    %c0_119 = arith.constant 0 : index
    %298 = vector.load %arg13[%c0_118, %c0_119] : memref<1x1xf32, #tpu.memory_space<vmem>>, vector<1x1xf32>
    tpu.vector_store %arg13[%c0_118, %c0_119], %297 {strides = array<i32>} : memref<1x1xf32, #tpu.memory_space<vmem>>, vector<1x1xf32>,
    %299 = arith.subf %260, %263 : vector<16x1xf32>
    %cst_120 = arith.constant 0.000000e+00 : f32
    %300 = vector.broadcast %cst_120 : f32 to vector<16x1xf32>
    %301 = arith.cmpf ogt, %299, %300 : vector<16x1xf32>
    %cst_121 = arith.constant 0.000000e+00 : f32
    %302 = vector.broadcast %cst_121 : f32 to vector<16x1xf32>
    %303 = arith.cmpf olt, %299, %302 : vector<16x1xf32>
    %cst_122 = arith.constant -1.000000e+00 : f32
    %cst_123 = arith.constant 0.000000e+00 : f32
    %304 = vector.broadcast %cst_122 : f32 to vector<16x1xf32>
    %305 = vector.broadcast %cst_123 : f32 to vector<16x1xf32>
    %306 = arith.select %303, %304, %305 : vector<16x1xi1>, vector<16x1xf32>
    %cst_124 = arith.constant 1.000000e+00 : f32
    %307 = vector.broadcast %cst_124 : f32 to vector<16x1xf32>
    %308 = arith.select %301, %307, %306 : vector<16x1xi1>, vector<16x1xf32>
    %cst_125 = arith.constant 1.000000e+00 : f32
    %309 = vector.broadcast %cst_125 : f32 to vector<16x1xf32>
    %310 = arith.addf %308, %309 : vector<16x1xf32>
    %cst_126 = arith.constant 5.000000e-01 : f32
    %311 = vector.broadcast %cst_126 : f32 to vector<16x1xf32>
    %312 = arith.mulf %310, %311 : vector<16x1xf32>
    %313 = arith.mulf %312, %257 : vector<16x1xf32>
    %314 = vector.shape_cast %313 : vector<16x1xf32> to vector<1x16x1xf32>
    %cst_127 = arith.constant dense<0.000000e+00> : vector<1xf32>
    %315 = vector.multi_reduction <add>, %314, %cst_127 [1, 2] : vector<1x16x1xf32> to vector<1xf32>
    %316 = vector.shape_cast %315 : vector<1xf32> to vector<1x1x1xf32>
    %317 = vector.extract %316[0, 0, 0] : f32 from vector<1x1x1xf32>
    %318 = vector.broadcast %317 : f32 to vector<1x1xf32>
    %319 = arith.divf %318, %278 : vector<1x1xf32>
    %c0_128 = arith.constant 0 : index
    %c0_129 = arith.constant 0 : index
    %320 = vector.load %arg14[%c0_128, %c0_129] : memref<1x1xf32, #tpu.memory_space<vmem>>, vector<1x1xf32>
    tpu.vector_store %arg14[%c0_128, %c0_129], %319 {strides = array<i32>} : memref<1x1xf32, #tpu.memory_space<vmem>>, vector<1x1xf32>,
    return
  }
}

</mosaic_0001>

<bundles_post_ra>
// kernel: tpu_custom_call.1
= control target key start
LH: loop header
LB: loop body
LE: loop exit
PB: predicated region body
PF: predicated region fallthrough
CT: control target
= control target key end

     0   :  { %21 = vsyncpa [#allocation3], 0  ;;  %s3978_s0 = inlined_call_operand.vmem [shape: f32[16,32], index: 0, kind: input, shape index: {}]   ;;  %s3979_s1 = inlined_call_operand.vmem [shape: f32[16,1], index: 1, kind: input, shape index: {}]   ;;  %s3980_s2 = inlined_call_operand.hbm [shape: f32[2,32,96], index: 2, kind: input, shape index: {}]   ;;  %s3981_s3 = inlined_call_operand.hbm [shape: f32[2,1,96], index: 3, kind: input, shape index: {}]   ;;  %s3982_s4 = inlined_call_operand.hbm [shape: f32[2,32,32], index: 4, kind: input, shape index: {}]   ;;  %s3983_s5 = inlined_call_operand.hbm [shape: f32[2,1,32], index: 5, kind: input, shape index: {}]   ;;  %s3984_s6 = inlined_call_operand.hbm [shape: f32[2,32,32], index: 6, kind: input, shape index: {}]   ;;  %s3985_s7 = inlined_call_operand.hbm [shape: f32[2,1,32], index: 7, kind: input, shape index: {}]   ;;  %s3986_s8 = inlined_call_operand.hbm [shape: f32[1,32], index: 8, kind: input, shape index: {}]   ;;  %s3987_s9 = inlined_call_operand.vmem [shape: f32[1,32], index: 9, kind: input, shape index: {}]   ;;  %s3988_s10 = inlined_call_operand.vmem [shape: f32[16,32], index: 10, kind: input, shape index: {}]   ;;  %s3989_s11 = inlined_call_operand.vmem [shape: f32[16,32], index: 11, kind: input, shape index: {}]   ;;  %s3990_s12 = inlined_call_operand.vmem [shape: f32[16,1], index: 12, kind: input, shape index: {}]   ;;  %s3991_s13 = inlined_call_operand.hbm [shape: f32[1,1], index: 13, kind: output, shape index: {0}]   ;;  %s3992_s14 = inlined_call_operand.hbm [shape: f32[1,1], index: 14, kind: output, shape index: {1}]   ;;  %s3993_s15 = inlined_call_operand.hbm [shape: f32[2,8,32], index: 15, kind: output, shape index: {2}]  }
   0x1   :  { %22 = vsyncpa [#allocation6], 0 }
   0x2   :  { %23 = vsyncpa [#allocation9], 0 }
   0x3   :  { %24 = vsyncpa [#allocation12], 0 }
   0x4   :  { %25 = vsyncpa [#allocation4], 0 }
   0x5   :  { %26 = vsyncpa [#allocation16], 0  ;;  %s3384_s18 = smov [#allocation5]  }
   0x6   :  { %s48_s19 = sshll.u32 %s3384_s18, 4  ;;  %s49_s19 = int_to_ptr.vmem [resolvable:$true] %s48_s19 }
   0x7   :  { %s3180_s20 = scalar_lea.vmem %s49_s19, 32  ;;  %p3185_p1 = scmp.lt.s32.totalorder %s49_s19, %s49_s19 }
   0x8   :  { %p3181_p0 = scmp.ne.s32.totalorder %s49_s19, %s3180_s20  ;;  %p3186_p2 = scmp.lt.s32.totalorder %s3180_s20, %s3180_s20 }
   0xa   :  { %p3187_p3 = por %p3186_p2, %p3185_p1 }
   0xc   :  { %p3188_p4 = pnand %p3187_p3, %p3181_p0 }
   0xe   :  { %3191 = shalt.err (!%p3188_p4)
}
   0xf   :  { %s3385_s21 = smov 16   ;;  %s3386_s22 = smov 1  }
  0x10   :  { %54 = dma.hbm_to_vmem [thread:$0]  %s3981_s3, 32, %s49_s19, [#allocation6], %s3385_s21, %s3385_s21, %s3386_s22  }
  0x11   :  { %s3387_s25 = smov [#allocation8]   ;;  %s3388_s27 = smov [#allocation11]  }
  0x12   :  { %s72_s26 = sshll.u32 %s3387_s25, 4  ;;  %s96_s28 = sshll.u32 %s3388_s27, 4  ;;  %s73_s26 = int_to_ptr.vmem [resolvable:$true] %s72_s26  ;;  %s97_s28 = int_to_ptr.vmem [resolvable:$true] %s96_s28 }
  0x13   :  { %s3200_s29 = scalar_lea.vmem %s73_s26, 32  ;;  %p3205_p6 = scmp.lt.s32.totalorder %s73_s26, %s73_s26 }
  0x14   :  { %p3201_p5 = scmp.ne.s32.totalorder %s73_s26, %s3200_s29  ;;  %p3206_p7 = scmp.lt.s32.totalorder %s3200_s29, %s3200_s29 }
  0x16   :  { %p3207_p8 = por %p3206_p7, %p3205_p6 }
  0x18   :  { %p3208_p9 = pnand %p3207_p8, %p3201_p5 }
  0x1a   :  { %3211 = shalt.err (!%p3208_p9)
}
  0x1b   :  { %78 = dma.hbm_to_vmem [thread:$0]  %s3983_s5, 32, %s73_s26, [#allocation9], %s3385_s21, %s3385_s21, %s3386_s22  }
  0x1c   :  { %s3220_s3 = scalar_lea.vmem %s97_s28, 32  ;;  %p3225_p11 = scmp.lt.s32.totalorder %s97_s28, %s97_s28 }
  0x1d   :  { %p3221_p10 = scmp.ne.s32.totalorder %s97_s28, %s3220_s3  ;;  %p3226_p12 = scmp.lt.s32.totalorder %s3220_s3, %s3220_s3 }
  0x1f   :  { %p3227_p13 = por %p3226_p12, %p3225_p11 }
  0x21   :  { %p3228_p0 = pnand %p3227_p13, %p3221_p10 }
  0x23   :  { %3231 = shalt.err (!%p3228_p0)
}
  0x24   :  { %102 = dma.hbm_to_vmem [thread:$0]  %s3985_s7, 32, %s97_s28, [#allocation12], %s3385_s21, %s3385_s21, %s3386_s22  }
  0x25   :  { %s3389_s19 = smov [#allocation2]  }
  0x26   :  { %s36_s20 = sshll.u32 %s3389_s19, 4  ;;  %s37_s20 = int_to_ptr.vmem [resolvable:$true] %s36_s20 }
  0x27   :  { %s3240_s23 = scalar_lea.vmem %s37_s20, 1024  ;;  %p3245_p2 = scmp.lt.s32.totalorder %s37_s20, %s37_s20 }
  0x28   :  { %p3241_p1 = scmp.ne.s32.totalorder %s37_s20, %s3240_s23  ;;  %p3246_p3 = scmp.lt.s32.totalorder %s3240_s23, %s3240_s23 }
  0x2a   :  { %p3247_p4 = por %p3246_p3, %p3245_p2 }
  0x2c   :  { %p3248_p5 = pnand %p3247_p4, %p3241_p1 }
  0x2e   :  { %3251 = shalt.err (!%p3248_p5)
}
  0x2f   :  { %s3390_s5 = smov 128   ;;  %s3391_s24 = smov 8  }
  0x30   :  { %42 = dma.hbm_to_vmem [thread:$0]  %s3980_s2, 1024, %s37_s20, [#allocation3], %s3390_s5, %s3390_s5, %s3391_s24  }
  0x31   :  { %s3392_s7 = smov [#allocation7]   ;;  %s3393_s27 = smov [#allocation10]  }
  0x32   :  { %s60_s22 = sshll.u32 %s3392_s7, 4  ;;  %s84_s28 = sshll.u32 %s3393_s27, 4  ;;  %s61_s22 = int_to_ptr.vmem [resolvable:$true] %s60_s22  ;;  %s85_s28 = int_to_ptr.vmem [resolvable:$true] %s84_s28 }
  0x33   :  { %s3260_s29 = scalar_lea.vmem %s61_s22, 1024  ;;  %p3265_p7 = scmp.lt.s32.totalorder %s61_s22, %s61_s22 }
  0x34   :  { %p3261_p6 = scmp.ne.s32.totalorder %s61_s22, %s3260_s29  ;;  %p3266_p8 = scmp.lt.s32.totalorder %s3260_s29, %s3260_s29 }
  0x36   :  { %p3267_p9 = por %p3266_p8, %p3265_p7 }
  0x38   :  { %p3268_p10 = pnand %p3267_p9, %p3261_p6 }
  0x3a   :  { %3271 = shalt.err (!%p3268_p10)
}
  0x3b   :  { %66 = dma.hbm_to_vmem [thread:$0]  %s3982_s4, 1024, %s61_s22, [#allocation6], %s3390_s5, %s3390_s5, %s3391_s24  }
  0x3c   :  { %s3280_s2 = scalar_lea.vmem %s85_s28, 1024  ;;  %p3285_p12 = scmp.lt.s32.totalorder %s85_s28, %s85_s28 }
  0x3d   :  { %p3281_p11 = scmp.ne.s32.totalorder %s85_s28, %s3280_s2  ;;  %p3286_p13 = scmp.lt.s32.totalorder %s3280_s2, %s3280_s2 }
  0x3f   :  { %p3287_p0 = por %p3286_p13, %p3285_p12 }
  0x41   :  { %p3288_p1 = pnand %p3287_p0, %p3281_p11 }
  0x43   :  { %3291 = shalt.err (!%p3288_p1)
}
  0x44   :  { %90 = dma.hbm_to_vmem [thread:$0]  %s3984_s6, 1024, %s85_s28, [#allocation9], %s3390_s5, %s3390_s5, %s3391_s24  }
  0x45   :  { %s3394_s18 = smov [#allocation13]  }
  0x46   :  { %s109_s19 = sshll.u32 %s3394_s18, 4  ;;  %s110_s19 = int_to_ptr.vmem [resolvable:$true] %s109_s19 }
  0x47   :  { %s3300_s20 = scalar_lea.vmem %s110_s19, 16  ;;  %s3304_s4 = scalar_lea.vmem %s110_s19, 32 }
  0x48   :  { %p3301_p2 = scmp.ne.s32.totalorder %s110_s19, %s3300_s20  ;;  %p3305_p3 = scmp.lt.s32.totalorder %s110_s19, %s110_s19 }
  0x49   :  { %p3306_p4 = scmp.lt.s32.totalorder %s3304_s4, %s3300_s20 }
  0x4b   :  { %p3307_p5 = por %p3306_p4, %p3305_p3 }
  0x4d   :  { %p3308_p6 = pnand %p3307_p5, %p3301_p2 }
  0x4f   :  { %3311 = shalt.err (!%p3308_p6)
}
  0x50   :  { %112 = dma.hbm_to_vmem [thread:$0]  %s3986_s8, 16, %s110_s19, [#allocation12]  }
  0x51   :  { %3372 = dma.done.wait [#allocation3], 1024  }
  0x52   :  { %3373 = vsyncadd [#allocation3], 4294966272 }
  0x53   :  { %3374 = dma.done.wait [#allocation6], 1056  }
  0x54   :  { %3375 = vsyncadd [#allocation6], 4294966240 }
  0x55   :  { %3376 = dma.done.wait [#allocation9], 1056  }
  0x56   :  { %3377 = vsyncadd [#allocation9], 4294966240 }
  0x57   :  { %3378 = dma.done.wait [#allocation12], 48  }
  0x58   :  { %3379 = vsyncadd [#allocation12], 4294967248  ;;  %vm153_vm0 = vcmask 261120   ;;  %v142_v0 = vld [vmem:[%s3978_s0] sm:$0xff]  ;;  %v143_v1 = vld [vmem:[%s3978_s0 + $0x8] sm:$0xff]  ;;  %v3395_v14 = vmov 0.0   ;;  %v148_v50 = vlaneseq }
  0x59   :  { %v154_v2 = vsel %vm153_vm0, %v142_v0, 0.0  ;;  %v157_v3 = vsel %vm153_vm0, %v143_v1, 0.0  ;;  %2902 = vmatprep.subr.mxu0 %v3395_v14  ;;  %2907 = vmatprep.subr.mxu1 %v3395_v14  ;;  %vm3396_vm1 = vmmov 0   ;;  %v3540_v21 = vld [vmem:[#allocation13] ss:$0 sm:$0xff]  ;;  %v383_v28 = vld [vmem:[#allocation2 + $0x18] sm:$0xff] }
  0x5a   :  { %155 = vadd.xlane.f32.xlu0 %v154_v2  ;;  %2904 = vmatprep.mubr.msk.f32.mxu0 %vm3396_vm1, %v3395_v14  ;;  %v3546_v24 = vld [vmem:[%s3987_s9] ss:$0 sm:$0xff]  ;;  %v382_v32 = vld [vmem:[#allocation2 + $0x10] sm:$0xff]  ;;  %v3397_v33 = vmov 1.0   ;;  %v381_v34 = vld [vmem:[#allocation2 + $0x8] sm:$0xff]  ;;  %v3398_v36 = vmov 0  }
  0x5b   :  { %2909 = vmatprep.mubr.msk.f32.mxu1 %vm3396_vm1, %v3395_v14  ;;  %v380_v35 = vld [vmem:[#allocation2] sm:$0xff]  ;;  %3099 = vset.pattern.permute.xlu1 %v3398_v36  ;;  %s3399_s27 = smov 96   ;;  %vm471_vm2 = vcmask 130048   ;;  %v3595_v52 = vshrl.u32 %v148_v50, 7  ;;  %v3602_v57 = vand.u32 127, %v148_v50  ;;  %vm627_vm7 = vcmask 64512  }
  0x5c   :  { %3098 = vset.pattern.permute.xlu0 %v3398_v36  ;;  %v2774_v39 = vld [vmem:[#allocation5] ss:$0 sm:$0xff]  ;;  %s3400_s28 = smov 64   ;;  %s3401_s29 = smov 80  }
  0x5d   :  { %v3598_v54 = vsub.s32 0, %v3595_v52  ;;  %vm152_vm5 = vcmp.le.s32.totalorder %v3602_v57, %v3595_v52  ;;  %s3402_s30 = smov 112   ;;  %s3403_s16 = smov 48  }
  0x5e   :  { %158 = vadd.xlane.f32.xlu0 %v157_v3  ;;  %s3407_s2 = smov [#allocation17]  }
  0x5f   :  { %s2744_s3 = sshll.u32 %s3407_s2, 4  ;;  %s3959_s3 = int_to_ptr.vmem [resolvable:$true] %s2744_s3 }
  0xe3   :  { %v156_v4 = vpop.xlane.xlu0 %155 }
  0xe4   :  { %v161_v5 = vmul.f32 0.03125, %v156_v4 }
  0xe6   :  { %v163_v6 = vsub.f32 %v142_v0, %v161_v5 }
  0xe7   :  { %v159_v7 = vpop.xlane.xlu0 %158 }
  0xe8   :  { %v162_v8 = vmul.f32 0.03125, %v159_v7  ;;  %v165_v9 = vmul.f32 %v163_v6, %v163_v6  ;;  %v181_v22 = vmul.f32 %v3540_v21, %v163_v6 }
  0xea   :  { %v164_v10 = vsub.f32 %v143_v1, %v162_v8  ;;  %v167_v11 = vsel %vm153_vm0, %v165_v9, 0.0 }
  0xeb   :  { %168 = vadd.xlane.f32.xlu1 %v167_v11 }
  0xec   :  { %v166_v12 = vmul.f32 %v164_v10, %v164_v10  ;;  %v182_v26 = vmul.f32 %v3540_v21, %v164_v10 }
  0xee   :  { %v170_v13 = vsel %vm153_vm0, %v166_v12, 0.0 }
  0xef   :  { %171 = vadd.xlane.f32.xlu1 %v170_v13 }
 0x174   :  { %v169_v15 = vpop.xlane.xlu1 %168 }
 0x175   :  { %v173_v16 = vmul.f32 0.03125, %v169_v15 }
 0x177   :  { %v183_v17 = vadd.f32 1e-08, %v173_v16 }
 0x178   :  { %v172_v18 = vpop.xlane.xlu1 %171 }
 0x179   :  { %3100 = vrsqrt.f32 %v183_v17  ;;  %v174_v19 = vmul.f32 0.03125, %v172_v18 }
 0x17b   :  { %v184_v20 = vadd.f32 1e-08, %v174_v19 }
 0x17d   :  { %3102 = vrsqrt.f32 %v184_v20 }
 0x186   :  { %v3101_v23 = vpop.eup %3100 }
 0x187   :  { %v187_v25 = vmul.f32 %v3101_v23, %v181_v22 }
 0x189   :  { %v3550_v27 = vadd.f32 %v3546_v24, %v187_v25 }
 0x18a   :  { %v3103_v29 = vpop.eup %3102 }
 0x18b   :  { %2903 = vmatpush3.xpose.msk.msra.mxu0 %vm153_vm0, %v3550_v27  ;;  %v188_v30 = vmul.f32 %v3103_v29, %v182_v26  ;;  %v197_v9 = vsel %vm153_vm0, %v3550_v27, 0.0 }
 0x18c   :  { %2912 = vmatprep.subr.mxu0 %v383_v28 }
 0x18d   :  { %v3555_v31 = vadd.f32 %v3546_v24, %v188_v30 }
 0x18e   :  { %2905 = vmatmul.mubr.msk.f32.vlgmr.msra.gmra.mxu0 %vm153_vm0, %v3397_v33 }
 0x18f   :  { %2908 = vmatpush3.xpose.msk.msra.mxu1 %vm153_vm0, %v3555_v31  ;;  %2913 = vmatpush3.msra.mxu0 %v383_v28  ;;  %v200_v8 = vsel %vm153_vm0, %v3555_v31, 0.0 }
 0x190   :  { %2920 = vmatprep.mubr.msk.f32.mxu0 %vm153_vm0, %v3550_v27  ;;  %2914 = vmatprep.subr.mxu0 %v382_v32 }
 0x191   :  { %2915 = vmatpush3.msra.mxu0 %v382_v32  ;;  %2923 = vmatprep.subr.mxu1 %v3395_v14 }
 0x192   :  { %2916 = vmatprep.subr.mxu0 %v381_v34  ;;  %2910 = vmatmul.mubr.msk.f32.vlgmr.msra.gmra.mxu1 %vm153_vm0, %v3397_v33 }
 0x193   :  { %2917 = vmatpush3.msra.mxu0 %v381_v34  ;;  %2925 = vmatprep.mubr.msk.f32.mxu1 %vm3396_vm1, %v3395_v14 }
 0x194   :  { %2918 = vmatprep.subr.mxu0 %v380_v35 }
 0x195   :  { %2919 = vmatpush3.msra.mxu0 %v380_v35 }
 0x196   :  { %2921 = vmatmul.mubr.msk.f32.vlgmr.msra.gmra.mxu0 %vm153_vm0, %v3555_v31  ;;  %2933 = vmatprep.subr.mxu0 %v3395_v14 }
 0x197   :  { %2935 = vmatprep.mubr.msk.f32.mxu0 %vm3396_vm1, %v3395_v14 }
 0x24e   :  { %v279_v37 = vpop.f32.mrf.mxu0 }
 0x24f   :  { %v356_v51 = vand.u32 2147483647, %v279_v37 }
 0x250   :  { %v2906_v38 = vpop.f32.mrf.mxu0 }
 0x251   :  { %vm358_vm3 = vcmp.gt.f32.partialorder %v356_v51, 0.0 }
 0x252   :  { %v352_v42 = vpop.f32.mrf.mxu1  ;;  %v362_v55 = vsel %vm358_vm3, 1, %v3398_v36 }
 0x253   :  { %v357_v53 = vand.u32 2147483647, %v352_v42  ;;  %v367_v56 = vrot.slane %v362_v55, %v3598_v54 }
 0x254   :  { %v2911_v46 = vpop.f32.mrf.mxu1 }
 0x255   :  { %vm359_vm4 = vcmp.gt.f32.partialorder %v357_v53, 0.0  ;;  %vm372_vm6 = vcmp.eq.s32.totalorder %v367_v56, 1 }
 0x256   :  { %v2922_v40 = vpop.f32.mrf.mxu0  ;;  %v363_v58 = vsel %vm359_vm4, 1, %v3398_v36  ;;  %vm3611_vm8 = vmand %vm152_vm5, %vm372_vm6 }
 0x257   :  { %v463_v41 = vadd.f32 %v2922_v40, %v2774_v39  ;;  %v371_v59 = vrot.slane %v363_v58, %v3598_v54 }
 0x258   :  { %v457_v43 = vpop.f32.mrf.mxu0 }
 0x259   :  { %v3575_v44 = vmax.f32 %v463_v41, 0.0  ;;  %v458_v45 = vadd.f32 %v2774_v39, %v457_v43  ;;  %vm373_vm9 = vcmp.eq.s32.totalorder %v371_v59, 1 }
 0x25a   :  { %vm3621_vm10 = vmand %vm152_vm5, %vm373_vm9 }
 0x25b   :  { %v3577_v47 = vmax.f32 %v458_v45, 0.0  ;;  %547 = vrot.lane.b32.xlu1 %v3575_v44, %s3399_s27 }
 0x25d   :  { %469 = vrot.lane.b32.xlu0 %v3577_v47, %s3399_s27 }
 0x2cd   :  { %v548_v49 = vpop.permute.xlu1 %547 }
 0x2cf   :  { %v470_v48 = vpop.permute.xlu0 %469 }
 0x2d0   :  { %2924 = vmatpush3.xpose.msk.msra.mxu1 %vm471_vm2, %v470_v48 }
 0x2d1   :  { %2928 = vmatprep.subr.mxu1 %v3395_v14 }
 0x2d3   :  { %2926 = vmatmul.mubr.msk.f32.vlgmr.msra.gmra.mxu1 %vm471_vm2, %v3577_v47 }
 0x2d4   :  { %2929 = vmatpush3.xpose.msk.msra.mxu1 %vm471_vm2, %v548_v49  ;;  %2930 = vmatprep.mubr.msk.f32.mxu1 %vm3396_vm1, %v3395_v14 }
 0x2d5   :  { %2938 = vmatprep.subr.mxu1 %v3395_v14 }
 0x2d7   :  { %2931 = vmatmul.mubr.msk.f32.vlgmr.msra.gmra.mxu1 %vm471_vm2, %v3575_v44 }
 0x2d8   :  { %2940 = vmatprep.mubr.msk.f32.mxu1 %vm3396_vm1, %v3395_v14 }
 0x393   :  { %v542_v60 = vpop.f32.mrf.mxu1 }
 0x394   :  { %v623_v61 = vmul.f32 0.25, %v542_v60 }
 0x395   :  { %v2927_v62 = vpop.f32.mrf.mxu1 }
 0x396   :  { %v625_v0 = vsel %vm3611_vm8, %v623_v61, -4.2949673e+09 }
 0x397   :  { %v619_v1 = vpop.f32.mrf.mxu1  ;;  %v628_v2 = vsel %vm627_vm7, %v625_v0, -inf }
 0x398   :  { %v624_v3 = vmul.f32 0.25, %v619_v1  ;;  %629 = vmax.xlane.f32.xlu1 %v628_v2 }
 0x399   :  { %v2932_v4 = vpop.f32.mrf.mxu1 }
 0x39a   :  { %v626_v6 = vsel %vm3621_vm10, %v624_v3, -4.2949673e+09 }
 0x39b   :  { %v631_v7 = vsel %vm627_vm7, %v626_v6, -inf }
 0x39c   :  { %632 = vmax.xlane.f32.xlu0 %v631_v7  ;;  %201 = vadd.xlane.f32.xlu1 %v200_v8 }
 0x3a0   :  { %198 = vadd.xlane.f32.xlu0 %v197_v9 }
 0x3ad   :  { %728 = vrot.lane.b32.xlu1 %v3575_v44, %s3400_s28 }
 0x3b1   :  { %806 = vrot.lane.b32.xlu1 %v3577_v47, %s3401_s29 }
 0x3b5   :  { %884 = vrot.lane.b32.xlu1 %v3575_v44, %s3401_s29 }
 0x421   :  { %v630_v10 = vpop.xlane.xlu1 %629 }
 0x422   :  { %v634_v11 = vsub.f32 %v625_v0, %v630_v10 }
 0x424   :  { %v636_v12 = vmul.f32 1.442695, %v634_v11 }
 0x425   :  { %v633_v13 = vpop.xlane.xlu0 %632  ;;  %v202_v15 = vpop.xlane.xlu1 %201 }
 0x426   :  { %3104 = vpow2.f32 %v636_v12  ;;  %v635_v16 = vsub.f32 %v626_v6, %v633_v13  ;;  %v204_v35 = vand.u32 2147483647, %v202_v15 }
 0x428   :  { %v638_v17 = vmul.f32 1.442695, %v635_v16  ;;  %vm206_vm12 = vcmp.gt.f32.partialorder %v204_v35, 0.0 }
 0x429   :  { %v729_v18 = vpop.permute.xlu1 %728  ;;  %v199_v26 = vpop.xlane.xlu0 %198  ;;  %v2773_v43 = vsel %vm206_vm12, 1.0, %v3395_v14 }
 0x42a   :  { %3106 = vpow2.f32 %v638_v17  ;;  %2939 = vmatpush3.msra.mxu1 %v729_v18  ;;  %v203_v34 = vand.u32 2147483647, %v199_v26  ;;  %v1152_v26 = vld [vmem:[#allocation7] sm:$0xff] }
 0x42b   :  { %2948 = vmatprep.subr.mxu1 %v3395_v14 }
 0x42c   :  { %vm205_vm11 = vcmp.gt.f32.partialorder %v203_v34, 0.0 }
 0x42d   :  { %v807_v25 = vpop.permute.xlu1 %806  ;;  %v3651_v39 = vsel %vm205_vm11, 1.0, %v3395_v14 }
 0x431   :  { %v885_v28 = vpop.permute.xlu1 %884 }
 0x433   :  { %v3105_v19 = vpop.eup %3104 }
 0x434   :  { %v640_v20 = vsel %vm627_vm7, %v3105_v19, 0.0 }
 0x435   :  { %641 = vadd.xlane.f32.xlu0 %v640_v20 }
 0x437   :  { %v3107_v22 = vpop.eup %3106 }
 0x438   :  { %v643_v23 = vsel %vm627_vm7, %v3107_v22, 0.0 }
 0x439   :  { %644 = vadd.xlane.f32.xlu1 %v643_v23  ;;  %v1154_v23 = vld [vmem:[#allocation7 + $0x10] sm:$0xff] }
 0x44a   :  { %882 = vrot.lane.b32.xlu1 %v3575_v44, %s3402_s30 }
 0x44b   :  { %652 = vrot.lane.b32.xlu0 %v3577_v47, %s3400_s28 }
 0x44f   :  { %804 = vrot.lane.b32.xlu0 %v3577_v47, %s3402_s30 }
 0x4be   :  { %v642_v29 = vpop.xlane.xlu0 %641 }
 0x4bf   :  { %3108 = vrcp.f32 %v642_v29 }
 0x4c2   :  { %v653_v30 = vpop.permute.xlu0 %652  ;;  %v645_v32 = vpop.xlane.xlu1 %644 }
 0x4c3   :  { %3110 = vrcp.f32 %v645_v32  ;;  %2934 = vmatpush3.msra.mxu0 %v653_v30 }
 0x4c4   :  { %2943 = vmatprep.subr.mxu0 %v3395_v14 }
 0x4c6   :  { %v805_v46 = vpop.permute.xlu0 %804  ;;  %v883_v48 = vpop.permute.xlu1 %882 }
 0x4cc   :  { %v3109_v37 = vpop.eup %3108 }
 0x4cd   :  { %v3648_v38 = vmul.f32 %v3109_v37, %v3105_v19 }
 0x4cf   :  { %v650_v40 = vmul.f32 %v3651_v39, %v3648_v38 }
 0x4d0   :  { %v3111_v41 = vpop.eup %3110 }
 0x4d1   :  { %2936 = vmatmul.mubr.msk.f32.vlgmr.msra.gmra.mxu0 %vm627_vm7, %v650_v40  ;;  %v3656_v42 = vmul.f32 %v3111_v41, %v3107_v22 }
 0x4d2   :  { %2944 = vmatpush3.xpose.msk.msra.mxu0 %vm471_vm2, %v807_v25  ;;  %2945 = vmatprep.mubr.msk.f32.mxu0 %vm3396_vm1, %v3395_v14  ;;  %v1153_v25 = vld [vmem:[#allocation7 + $0x8] sm:$0xff] }
 0x4d3   :  { %v651_v45 = vmul.f32 %v2773_v43, %v3656_v42  ;;  %2953 = vmatprep.subr.mxu0 %v3395_v14 }
 0x4d5   :  { %2941 = vmatmul.mubr.msk.f32.vlgmr.msra.gmra.mxu1 %vm627_vm7, %v651_v45  ;;  %2946 = vmatmul.mubr.msk.f32.vlgmr.msra.gmra.mxu0 %vm471_vm2, %v805_v46  ;;  %v1248_v45 = vld [vmem:[#allocation10 + $0x10] sm:$0xff]  ;;  %v1246_v46 = vld [vmem:[#allocation10] sm:$0xff] }
 0x4d6   :  { %2949 = vmatpush3.xpose.msk.msra.mxu1 %vm471_vm2, %v885_v28  ;;  %2950 = vmatprep.mubr.msk.f32.mxu1 %vm3396_vm1, %v3395_v14 }
 0x4d7   :  { %2958 = vmatprep.subr.mxu1 %v3395_v14  ;;  %2955 = vmatprep.mubr.msk.f32.mxu0 %vm3396_vm1, %v3395_v14 }
 0x4d9   :  { %2951 = vmatmul.mubr.msk.f32.vlgmr.msra.gmra.mxu1 %vm471_vm2, %v883_v48  ;;  %v144_v48 = vld [vmem:[%s3979_s1] sm:$0xff] }
 0x4da   :  { %2960 = vmatprep.mubr.msk.f32.mxu1 %vm3396_vm1, %v3395_v14 }
 0x591   :  { %v3675_v49 = vpop.f32.mrf.mxu0 }
 0x593   :  { %v2937_v50 = vpop.f32.mrf.mxu0 }
 0x595   :  { %v3677_v51 = vpop.f32.mrf.mxu1  ;;  %v878_v53 = vpop.f32.mrf.mxu0 }
 0x596   :  { %v960_v55 = vmul.f32 0.25, %v878_v53 }
 0x597   :  { %v2942_v56 = vpop.f32.mrf.mxu1  ;;  %v2947_v58 = vpop.f32.mrf.mxu0 }
 0x598   :  { %v962_v59 = vsel %vm3611_vm8, %v960_v55, -4.2949673e+09 }
 0x599   :  { %v956_v60 = vpop.f32.mrf.mxu1  ;;  %v964_v61 = vsel %vm627_vm7, %v962_v59, -inf }
 0x59a   :  { %v961_v62 = vmul.f32 0.25, %v956_v60  ;;  %965 = vmax.xlane.f32.xlu0 %v964_v61 }
 0x59b   :  { %v2952_v0 = vpop.f32.mrf.mxu1 }
 0x59c   :  { %v963_v1 = vsel %vm3621_vm10, %v961_v62, -4.2949673e+09 }
 0x59d   :  { %v967_v2 = vsel %vm627_vm7, %v963_v1, -inf }
 0x59e   :  { %968 = vmax.xlane.f32.xlu1 %v967_v2 }
 0x5af   :  { %1064 = vrot.lane.b32.xlu1 %v3575_v44, %s3403_s16 }
 0x623   :  { %v966_v3 = vpop.xlane.xlu0 %965 }
 0x624   :  { %v970_v4 = vsub.f32 %v962_v59, %v966_v3  ;;  %v2792_v59 = vld [vmem:[#allocation11] ss:$0 sm:$0xff] }
 0x626   :  { %v972_v63 = vmul.f32 1.442695, %v970_v4 }
 0x627   :  { %v969_v6 = vpop.xlane.xlu1 %968 }
 0x628   :  { %3112 = vpow2.f32 %v972_v63  ;;  %v971_v7 = vsub.f32 %v963_v1, %v969_v6 }
 0x62a   :  { %v974_v8 = vmul.f32 1.442695, %v971_v7 }
 0x62b   :  { %v1065_v9 = vpop.permute.xlu1 %1064 }
 0x62c   :  { %3114 = vpow2.f32 %v974_v8  ;;  %2959 = vmatpush3.msra.mxu1 %v1065_v9 }
 0x635   :  { %v3113_v10 = vpop.eup %3112 }
 0x636   :  { %v976_v5 = vsel %vm627_vm7, %v3113_v10, 0.0 }
 0x637   :  { %977 = vadd.xlane.f32.xlu0 %v976_v5 }
 0x639   :  { %v3115_v11 = vpop.eup %3114 }
 0x63a   :  { %v979_v12 = vsel %vm627_vm7, %v3115_v11, 0.0 }
 0x63b   :  { %980 = vadd.xlane.f32.xlu0 %v979_v12 }
 0x651   :  { %988 = vrot.lane.b32.xlu0 %v3577_v47, %s3403_s16  ;;  %v1155_v47 = vld [vmem:[#allocation7 + $0x18] sm:$0xff] }
 0x655   :  { %1342 = vperm.xlu0 %3098, %v144_v48  }
 0x6c0   :  { %v978_v44 = vpop.xlane.xlu0 %977 }
 0x6c1   :  { %3116 = vrcp.f32 %v978_v44 }
 0x6c4   :  { %v981_v13 = vpop.xlane.xlu0 %980 }
 0x6c5   :  { %3118 = vrcp.f32 %v981_v13 }
 0x6c8   :  { %v989_v15 = vpop.permute.xlu0 %988 }
 0x6c9   :  { %2954 = vmatpush3.msra.mxu0 %v989_v15 }
 0x6ca   :  { %2963 = vmatprep.subr.mxu0 %v1155_v47 }
 0x6ce   :  { %v3117_v16 = vpop.eup %3116 }
 0x6cf   :  { %v3691_v17 = vmul.f32 %v3117_v16, %v3113_v10 }
 0x6d0   :  { %v3726_v3 = vpop.permute.xlu0 %1342 }
 0x6d1   :  { %v986_v18 = vmul.f32 %v3651_v39, %v3691_v17 }
 0x6d2   :  { %v3119_v19 = vpop.eup %3118 }
 0x6d3   :  { %2956 = vmatmul.mubr.msk.f32.vlgmr.msra.gmra.mxu0 %vm627_vm7, %v986_v18  ;;  %v3696_v20 = vmul.f32 %v3119_v19, %v3115_v11 }
 0x6d4   :  { %2964 = vmatpush3.msra.mxu0 %v1155_v47 }
 0x6d5   :  { %v987_v22 = vmul.f32 %v2773_v43, %v3696_v20  ;;  %2965 = vmatprep.subr.mxu0 %v1154_v23  ;;  %v1249_v43 = vld [vmem:[#allocation10 + $0x18] sm:$0xff] }
 0x6d6   :  { %2966 = vmatpush3.msra.mxu0 %v1154_v23  ;;  %2974 = vmatprep.subr.mxu1 %v1249_v43 }
 0x6d7   :  { %2961 = vmatmul.mubr.msk.f32.vlgmr.msra.gmra.mxu1 %vm627_vm7, %v987_v22  ;;  %2967 = vmatprep.subr.mxu0 %v1153_v25 }
 0x6d8   :  { %2968 = vmatpush3.msra.mxu0 %v1153_v25  ;;  %2975 = vmatpush3.msra.mxu1 %v1249_v43  ;;  %v1561_v43 = vld [vmem:[#allocation2 + $0x20] sm:$0xff] }
 0x6d9   :  { %2969 = vmatprep.subr.mxu0 %v1152_v26  ;;  %2976 = vmatprep.subr.mxu1 %v1248_v45 }
 0x6da   :  { %2970 = vmatpush3.msra.mxu0 %v1152_v26  ;;  %2977 = vmatpush3.msra.mxu1 %v1248_v45 }
 0x6db   :  { %2985 = vmatprep.subr.mxu0 %v3395_v14 }
 0x793   :  { %v1060_v28 = vpop.f32.mrf.mxu0 }
 0x794   :  { %1142 = vrot.lane.b32.xlu1 %v1060_v28, %s3385_s21 }
 0x795   :  { %v2957_v29 = vpop.f32.mrf.mxu0 }
 0x797   :  { %v1136_v30 = vpop.f32.mrf.mxu1 }
 0x798   :  { %1144 = vrot.lane.b32.xlu1 %v1136_v30, %s3385_s21 }
 0x799   :  { %v2962_v32 = vpop.f32.mrf.mxu1 }
 0x806   :  { %v1143_v34 = vpop.permute.xlu1 %1142 }
 0x807   :  { %v1148_v35 = vsel %vm471_vm2, %v3675_v49, %v1143_v34  ;;  %v2789_v49 = vld [vmem:[#allocation8] ss:$0 sm:$0xff] }
 0x808   :  { %v1150_v37 = vadd.f32 %v1148_v35, %v3550_v27  ;;  %v1247_v27 = vld [vmem:[#allocation10 + $0x8] sm:$0xff]  ;;  %v1564_v35 = vld [vmem:[#allocation2 + $0x38] sm:$0xff] }
 0x809   :  { %2978 = vmatprep.subr.mxu1 %v1247_v27 }
 0x80a   :  { %2971 = vmatprep.mubr.msk.f32.mxu0 %vm153_vm0, %v1150_v37  ;;  %v1145_v39 = vpop.permute.xlu1 %1144  ;;  %2979 = vmatpush3.msra.mxu1 %v1247_v27  ;;  %v2801_v27 = vld [vmem:[#allocation5 + $0x1] ss:$0 sm:$0xff] }
 0x80b   :  { %v1149_v40 = vsel %vm471_vm2, %v3677_v51, %v1145_v39  ;;  %2980 = vmatprep.subr.mxu1 %v1246_v46 }
 0x80c   :  { %v1151_v41 = vadd.f32 %v1149_v40, %v3555_v31  ;;  %2981 = vmatpush3.msra.mxu1 %v1246_v46  ;;  %v145_v31 = vld [vmem:[%s3979_s1 + $0x8] sm:$0xff] }
 0x80d   :  { %1347 = vperm.xlu1 %3099, %v145_v31   ;;  %2990 = vmatprep.subr.mxu1 %v3395_v14 }
 0x80e   :  { %2972 = vmatmul.mubr.msk.f32.vlgmr.msra.gmra.mxu0 %vm153_vm0, %v1151_v41 }
 0x80f   :  { %2987 = vmatprep.mubr.msk.f32.mxu0 %vm3396_vm1, %v3395_v14 }
 0x888   :  { %v3724_v0 = vpop.permute.xlu1 %1347 }
 0x8ce   :  { %v2973_v50 = vpop.f32.mrf.mxu0 }
 0x8cf   :  { %v1241_v51 = vadd.f32 %v2973_v50, %v2789_v49 }
 0x8d0   :  { %v1235_v53 = vpop.f32.mrf.mxu0 }
 0x8d1   :  { %v1236_v55 = vadd.f32 %v2789_v49, %v1235_v53  ;;  %v1245_v58 = vmax.f32 %v1241_v51, 0.0 }
 0x8d3   :  { %v1244_v56 = vmax.f32 %v1236_v55, 0.0 }
 0x8d5   :  { %2982 = vmatprep.mubr.msk.f32.mxu1 %vm153_vm0, %v1244_v56 }
 0x8d6   :  { %2983 = vmatmul.mubr.msk.f32.vlgmr.msra.gmra.mxu1 %vm153_vm0, %v1245_v58 }
 0x8d7   :  { %2992 = vmatprep.mubr.msk.f32.mxu1 %vm3396_vm1, %v3395_v14 }
 0x996   :  { %v2984_v60 = vpop.f32.mrf.mxu1 }
 0x997   :  { %v1335_v61 = vadd.f32 %v2984_v60, %v2792_v59 }
 0x998   :  { %v1329_v62 = vpop.f32.mrf.mxu1 }
 0x999   :  { %v1339_v1 = vadd.f32 %v1335_v61, %v1151_v41  ;;  %v1330_v2 = vadd.f32 %v2792_v59, %v1329_v62  ;;  %v1563_v41 = vld [vmem:[#allocation2 + $0x30] sm:$0xff] }
 0x99b   :  { %v1338_v4 = vadd.f32 %v1330_v2, %v1150_v37  ;;  %v1351_v63 = vmul.f32 %v3724_v0, %v1339_v1 }
 0x99d   :  { %v1350_v6 = vmul.f32 %v3726_v3, %v1338_v4  ;;  %v1355_v7 = vsel %vm153_vm0, %v1351_v63, 0.0 }
 0x99e   :  { %1356 = vadd.xlane.f32.xlu0 %v1355_v7 }
 0x99f   :  { %v1352_v8 = vsel %vm153_vm0, %v1350_v6, 0.0 }
 0x9a0   :  { %1353 = vadd.xlane.f32.xlu1 %v1352_v8 }
 0xa27   :  { %v1357_v9 = vpop.xlane.xlu0 %1356 }
 0xa28   :  { %v1359_v10 = vmul.f32 0.03125, %v1357_v9 }
 0xa29   :  { %v1354_v5 = vpop.xlane.xlu1 %1353 }
 0xa2a   :  { %v1358_v11 = vmul.f32 0.03125, %v1354_v5  ;;  %v1361_v12 = vsub.f32 %v1351_v63, %v1359_v10 }
 0xa2c   :  { %v1360_v44 = vsub.f32 %v1350_v6, %v1358_v11  ;;  %v1363_v16 = vmul.f32 %v1361_v12, %v1361_v12  ;;  %v1373_v32 = vmul.f32 %v3540_v21, %v1361_v12 }
 0xa2e   :  { %v1362_v13 = vmul.f32 %v1360_v44, %v1360_v44  ;;  %v1367_v18 = vsel %vm153_vm0, %v1363_v16, 0.0  ;;  %v1372_v28 = vmul.f32 %v3540_v21, %v1360_v44  ;;  %v1562_v21 = vld [vmem:[#allocation2 + $0x28] sm:$0xff] }
 0xa30   :  { %v1364_v15 = vsel %vm153_vm0, %v1362_v13, 0.0 }
 0xa31   :  { %1365 = vadd.xlane.f32.xlu0 %v1364_v15 }
 0xa35   :  { %1368 = vadd.xlane.f32.xlu0 %v1367_v18 }
 0xaba   :  { %v1366_v19 = vpop.xlane.xlu0 %1365 }
 0xabb   :  { %v1370_v22 = vmul.f32 0.03125, %v1366_v19 }
 0xabd   :  { %v1374_v47 = vadd.f32 1e-08, %v1370_v22 }
 0xabe   :  { %v1369_v23 = vpop.xlane.xlu0 %1368 }
 0xabf   :  { %3120 = vrsqrt.f32 %v1374_v47  ;;  %v1371_v25 = vmul.f32 0.03125, %v1369_v23 }
 0xac1   :  { %v1375_v26 = vadd.f32 1e-08, %v1371_v25 }
 0xac3   :  { %3122 = vrsqrt.f32 %v1375_v26 }
 0xacc   :  { %v3121_v29 = vpop.eup %3120 }
 0xacd   :  { %v1378_v30 = vmul.f32 %v3121_v29, %v1372_v28 }
 0xacf   :  { %v3737_v34 = vadd.f32 %v3546_v24, %v1378_v30 }
 0xad0   :  { %v3123_v37 = vpop.eup %3122 }
 0xad1   :  { %2986 = vmatpush3.xpose.msk.msra.mxu0 %vm153_vm0, %v3737_v34  ;;  %v1379_v39 = vmul.f32 %v3123_v37, %v1373_v32  ;;  %v1382_v11 = vsel %vm153_vm0, %v3737_v34, 0.0 }
 0xad2   :  { %2995 = vmatprep.subr.mxu0 %v1564_v35 }
 0xad3   :  { %v3742_v40 = vadd.f32 %v3546_v24, %v1379_v39 }
 0xad4   :  { %2988 = vmatmul.mubr.msk.f32.vlgmr.msra.gmra.mxu0 %vm153_vm0, %v3397_v33 }
 0xad5   :  { %2991 = vmatpush3.xpose.msk.msra.mxu1 %vm153_vm0, %v3742_v40  ;;  %2996 = vmatpush3.msra.mxu0 %v1564_v35  ;;  %v1385_v44 = vsel %vm153_vm0, %v3742_v40, 0.0 }
 0xad6   :  { %3003 = vmatprep.mubr.msk.f32.mxu0 %vm153_vm0, %v3737_v34  ;;  %2997 = vmatprep.subr.mxu0 %v1563_v41 }
 0xad7   :  { %2998 = vmatpush3.msra.mxu0 %v1563_v41  ;;  %3006 = vmatprep.subr.mxu1 %v3395_v14 }
 0xad8   :  { %2999 = vmatprep.subr.mxu0 %v1562_v21  ;;  %2993 = vmatmul.mubr.msk.f32.vlgmr.msra.gmra.mxu1 %vm153_vm0, %v3397_v33 }
 0xad9   :  { %3000 = vmatpush3.msra.mxu0 %v1562_v21  ;;  %3008 = vmatprep.mubr.msk.f32.mxu1 %vm3396_vm1, %v3395_v14 }
 0xada   :  { %3001 = vmatprep.subr.mxu0 %v1561_v43 }
 0xadb   :  { %3002 = vmatpush3.msra.mxu0 %v1561_v43 }
 0xadc   :  { %3004 = vmatmul.mubr.msk.f32.vlgmr.msra.gmra.mxu0 %vm153_vm0, %v3742_v40  ;;  %3016 = vmatprep.subr.mxu0 %v3395_v14 }
 0xadd   :  { %3018 = vmatprep.mubr.msk.f32.mxu0 %vm3396_vm1, %v3395_v14 }
 0xb94   :  { %v1461_v24 = vpop.f32.mrf.mxu0 }
 0xb95   :  { %v1538_v58 = vand.u32 2147483647, %v1461_v24 }
 0xb96   :  { %v2989_v45 = vpop.f32.mrf.mxu0 }
 0xb97   :  { %vm1540_vm13 = vcmp.gt.f32.partialorder %v1538_v58, 0.0 }
 0xb98   :  { %v1534_v33 = vpop.f32.mrf.mxu1  ;;  %v1542_v60 = vsel %vm1540_vm13, 1, %v3398_v36  ;;  %vm2584_vm13 = vcmask 195584  }
 0xb99   :  { %v1539_v59 = vand.u32 2147483647, %v1534_v33  ;;  %v1547_v61 = vrot.slane %v1542_v60, %v3598_v54 }
 0xb9a   :  { %v2994_v51 = vpop.f32.mrf.mxu1 }
 0xb9b   :  { %vm1541_vm14 = vcmp.gt.f32.partialorder %v1539_v59, 0.0  ;;  %vm1552_vm15 = vcmp.eq.s32.totalorder %v1547_v61, 1 }
 0xb9c   :  { %v3005_v46 = vpop.f32.mrf.mxu0  ;;  %v1543_v62 = vsel %vm1541_vm14, 1, %v3398_v36  ;;  %vm3787_vm3 = vmand %vm152_vm5, %vm1552_vm15 }
 0xb9d   :  { %v1645_v31 = vadd.f32 %v3005_v46, %v2801_v27  ;;  %v1551_v1 = vrot.slane %v1543_v62, %v3598_v54 }
 0xb9e   :  { %v1639_v48 = vpop.f32.mrf.mxu0 }
 0xb9f   :  { %v3760_v49 = vmax.f32 %v1645_v31, 0.0  ;;  %v1640_v50 = vadd.f32 %v2801_v27, %v1639_v48  ;;  %vm1553_vm4 = vcmp.eq.s32.totalorder %v1551_v1, 1 }
 0xba0   :  { %vm3797_vm6 = vmand %vm152_vm5, %vm1553_vm4 }
 0xba1   :  { %v3762_v53 = vmax.f32 %v1640_v50, 0.0  ;;  %1728 = vrot.lane.b32.xlu0 %v3760_v49, %s3399_s27 }
 0xba3   :  { %1651 = vrot.lane.b32.xlu1 %v3762_v53, %s3399_s27 }
 0xc13   :  { %v1729_v56 = vpop.permute.xlu0 %1728 }
 0xc15   :  { %v1652_v55 = vpop.permute.xlu1 %1651 }
 0xc16   :  { %3007 = vmatpush3.xpose.msk.msra.mxu1 %vm471_vm2, %v1652_v55 }
 0xc17   :  { %3011 = vmatprep.subr.mxu1 %v3395_v14 }
 0xc19   :  { %3009 = vmatmul.mubr.msk.f32.vlgmr.msra.gmra.mxu1 %vm471_vm2, %v3762_v53 }
 0xc1a   :  { %3012 = vmatpush3.xpose.msk.msra.mxu1 %vm471_vm2, %v1729_v56  ;;  %3013 = vmatprep.mubr.msk.f32.mxu1 %vm3396_vm1, %v3395_v14 }
 0xc1b   :  { %3021 = vmatprep.subr.mxu1 %v3395_v14 }
 0xc1d   :  { %3014 = vmatmul.mubr.msk.f32.vlgmr.msra.gmra.mxu1 %vm471_vm2, %v3760_v49 }
 0xc1e   :  { %3023 = vmatprep.mubr.msk.f32.mxu1 %vm3396_vm1, %v3395_v14 }
 0xcd9   :  { %v1723_v2 = vpop.f32.mrf.mxu1 }
 0xcda   :  { %v1804_v4 = vmul.f32 0.25, %v1723_v2 }
 0xcdb   :  { %v3010_v63 = vpop.f32.mrf.mxu1 }
 0xcdc   :  { %v1806_v7 = vsel %vm3787_vm3, %v1804_v4, -4.2949673e+09 }
 0xcdd   :  { %v1800_v8 = vpop.f32.mrf.mxu1  ;;  %v1808_v36 = vsel %vm627_vm7, %v1806_v7, -inf }
 0xcde   :  { %v1805_v9 = vmul.f32 0.25, %v1800_v8  ;;  %1809 = vmax.xlane.f32.xlu1 %v1808_v36 }
 0xcdf   :  { %v3015_v54 = vpop.f32.mrf.mxu1 }
 0xce0   :  { %v1807_v5 = vsel %vm3797_vm6, %v1805_v9, -4.2949673e+09 }
 0xce1   :  { %v1811_v12 = vsel %vm627_vm7, %v1807_v5, -inf }
 0xce2   :  { %1383 = vadd.xlane.f32.xlu1 %v1382_v11  ;;  %1812 = vmax.xlane.f32.xlu0 %v1811_v12 }
 0xce6   :  { %1386 = vadd.xlane.f32.xlu0 %v1385_v44 }
 0xcf3   :  { %1832 = vrot.lane.b32.xlu1 %v3762_v53, %s3400_s28 }
 0xd67   :  { %v1810_v52 = vpop.xlane.xlu1 %1809 }
 0xd68   :  { %v1814_v57 = vsub.f32 %v1806_v7, %v1810_v52 }
 0xd6a   :  { %v1816_v13 = vmul.f32 1.442695, %v1814_v57 }
 0xd6b   :  { %v1384_v15 = vpop.xlane.xlu1 %1383  ;;  %v1813_v16 = vpop.xlane.xlu0 %1812 }
 0xd6c   :  { %3124 = vpow2.f32 %v1816_v13  ;;  %v1815_v18 = vsub.f32 %v1807_v5, %v1813_v16  ;;  %v1388_v35 = vand.u32 2147483647, %v1384_v15 }
 0xd6e   :  { %v1818_v19 = vmul.f32 1.442695, %v1815_v18  ;;  %vm1390_vm5 = vcmp.gt.f32.partialorder %v1388_v35, 0.0 }
 0xd6f   :  { %v1833_v22 = vpop.permute.xlu1 %1832  ;;  %v1387_v28 = vpop.xlane.xlu0 %1386  ;;  %v3827_v43 = vsel %vm1390_vm5, 1.0, %v3395_v14 }
 0xd70   :  { %3126 = vpow2.f32 %v1818_v19  ;;  %3017 = vmatpush3.msra.mxu0 %v1833_v22  ;;  %v1389_v39 = vand.u32 2147483647, %v1387_v28  ;;  %v2333_v28 = vld [vmem:[#allocation7 + $0x20] sm:$0xff] }
 0xd71   :  { %3026 = vmatprep.subr.mxu0 %v3395_v14 }
 0xd72   :  { %vm1391_vm8 = vcmp.gt.f32.partialorder %v1389_v39, 0.0 }
 0xd73   :  { %v2800_v31 = vsel %vm1391_vm8, 1.0, %v3395_v14 }
 0xd79   :  { %v3125_v47 = vpop.eup %3124 }
 0xd7a   :  { %v1820_v23 = vsel %vm627_vm7, %v3125_v47, 0.0 }
 0xd7b   :  { %1821 = vadd.xlane.f32.xlu1 %v1820_v23 }
 0xd7d   :  { %v3127_v25 = vpop.eup %3126 }
 0xd7e   :  { %v1823_v26 = vsel %vm627_vm7, %v3127_v25, 0.0 }
 0xd7f   :  { %1824 = vadd.xlane.f32.xlu0 %v1823_v26  ;;  %v2334_v26 = vld [vmem:[#allocation7 + $0x28] sm:$0xff] }
 0xd8c   :  { %1986 = vrot.lane.b32.xlu1 %v3762_v53, %s3401_s29 }
 0xd90   :  { %2064 = vrot.lane.b32.xlu1 %v3760_v49, %s3401_s29  ;;  %s3406_s29 = smov [#allocation15]  }
 0xd94   :  { %1984 = vrot.lane.b32.xlu1 %v3762_v53, %s3402_s30 }
 0xd95   :  { %1908 = vrot.lane.b32.xlu0 %v3760_v49, %s3400_s28 }
 0xd99   :  { %2062 = vrot.lane.b32.xlu0 %v3760_v49, %s3402_s30  ;;  %s2735_s30 = sshll.u32 %s3406_s29, 4  ;;  %s2736_s30 = int_to_ptr.vmem [resolvable:$true] %s2735_s30 }
 0xe04   :  { %v1822_v29 = vpop.xlane.xlu1 %1821 }
 0xe05   :  { %3128 = vrcp.f32 %v1822_v29 }
 0xe08   :  { %v1825_v30 = vpop.xlane.xlu0 %1824  ;;  %v1987_v37 = vpop.permute.xlu1 %1986 }
 0xe09   :  { %3130 = vrcp.f32 %v1825_v30 }
 0xe0c   :  { %v1909_v32 = vpop.permute.xlu0 %1908  ;;  %v2065_v24 = vpop.permute.xlu1 %2064 }
 0xe0d   :  { %3022 = vmatpush3.msra.mxu1 %v1909_v32 }
 0xe0e   :  { %3031 = vmatprep.subr.mxu1 %v3395_v14 }
 0xe10   :  { %v1985_v48 = vpop.permute.xlu1 %1984  ;;  %v2063_v50 = vpop.permute.xlu0 %2062 }
 0xe12   :  { %v3129_v41 = vpop.eup %3128 }
 0xe13   :  { %v3824_v21 = vmul.f32 %v3129_v41, %v3125_v47 }
 0xe15   :  { %v1830_v45 = vmul.f32 %v3827_v43, %v3824_v21 }
 0xe16   :  { %v3131_v27 = vpop.eup %3130 }
 0xe17   :  { %3019 = vmatmul.mubr.msk.f32.vlgmr.msra.gmra.mxu0 %vm627_vm7, %v1830_v45  ;;  %v3832_v46 = vmul.f32 %v3131_v27, %v3127_v25  ;;  %v2335_v25 = vld [vmem:[#allocation7 + $0x30] sm:$0xff]  ;;  %v2432_v27 = vld [vmem:[#allocation10 + $0x38] sm:$0xff] }
 0xe18   :  { %3027 = vmatpush3.xpose.msk.msra.mxu0 %vm471_vm2, %v1987_v37  ;;  %3028 = vmatprep.mubr.msk.f32.mxu0 %vm3396_vm1, %v3395_v14 }
 0xe19   :  { %v1831_v33 = vmul.f32 %v2800_v31, %v3832_v46  ;;  %3036 = vmatprep.subr.mxu0 %v3395_v14 }
 0xe1b   :  { %3024 = vmatmul.mubr.msk.f32.vlgmr.msra.gmra.mxu1 %vm627_vm7, %v1831_v33  ;;  %3029 = vmatmul.mubr.msk.f32.vlgmr.msra.gmra.mxu0 %vm471_vm2, %v1985_v48  ;;  %v2430_v33 = vld [vmem:[#allocation10 + $0x28] sm:$0xff]  ;;  %v2429_v48 = vld [vmem:[#allocation10 + $0x20] sm:$0xff] }
 0xe1c   :  { %3032 = vmatpush3.xpose.msk.msra.mxu1 %vm471_vm2, %v2065_v24  ;;  %3033 = vmatprep.mubr.msk.f32.mxu1 %vm3396_vm1, %v3395_v14 }
 0xe1d   :  { %3041 = vmatprep.subr.mxu1 %v3395_v14  ;;  %3038 = vmatprep.mubr.msk.f32.mxu0 %vm3396_vm1, %v3395_v14 }
 0xe1f   :  { %3034 = vmatmul.mubr.msk.f32.vlgmr.msra.gmra.mxu1 %vm471_vm2, %v2063_v50 }
 0xe20   :  { %3043 = vmatprep.mubr.msk.f32.mxu1 %vm3396_vm1, %v3395_v14  ;;  %vm2635_vm1 = vcmask 7168  }
 0xed7   :  { %v3851_v51 = vpop.f32.mrf.mxu0 }
 0xed9   :  { %v3020_v55 = vpop.f32.mrf.mxu0 }
 0xedb   :  { %v3853_v56 = vpop.f32.mrf.mxu1  ;;  %v2058_v58 = vpop.f32.mrf.mxu0 }
 0xedc   :  { %v2140_v59 = vmul.f32 0.25, %v2058_v58 }
 0xedd   :  { %v3025_v60 = vpop.f32.mrf.mxu1  ;;  %v3030_v61 = vpop.f32.mrf.mxu0 }
 0xede   :  { %v2142_v62 = vsel %vm3787_vm3, %v2140_v59, -4.2949673e+09  ;;  %v2819_v59 = vld [vmem:[#allocation11 + $0x1] ss:$0 sm:$0xff] }
 0xedf   :  { %v2136_v1 = vpop.f32.mrf.mxu1  ;;  %v2144_v2 = vsel %vm627_vm7, %v2142_v62, -inf }
 0xee0   :  { %v2141_v4 = vmul.f32 0.25, %v2136_v1  ;;  %2145 = vmax.xlane.f32.xlu1 %v2144_v2 }
 0xee1   :  { %v3035_v63 = vpop.f32.mrf.mxu1 }
 0xee2   :  { %v2143_v7 = vsel %vm3797_vm6, %v2141_v4, -4.2949673e+09 }
 0xee3   :  { %v2147_v8 = vsel %vm627_vm7, %v2143_v7, -inf }
 0xee4   :  { %2148 = vmax.xlane.f32.xlu0 %v2147_v8 }
 0xef1   :  { %2168 = vrot.lane.b32.xlu1 %v3762_v53, %s3403_s16 }
 0xf69   :  { %v2146_v36 = vpop.xlane.xlu1 %2145 }
 0xf6a   :  { %v2150_v9 = vsub.f32 %v2142_v62, %v2146_v36 }
 0xf6c   :  { %v2152_v54 = vmul.f32 1.442695, %v2150_v9 }
 0xf6d   :  { %v2169_v6 = vpop.permute.xlu1 %2168  ;;  %v2149_v5 = vpop.xlane.xlu0 %2148 }
 0xf6e   :  { %3132 = vpow2.f32 %v2152_v54  ;;  %v2151_v11 = vsub.f32 %v2143_v7, %v2149_v5  ;;  %3037 = vmatpush3.msra.mxu0 %v2169_v6 }
 0xf70   :  { %v2154_v12 = vmul.f32 1.442695, %v2151_v11 }
 0xf72   :  { %3134 = vpow2.f32 %v2154_v12 }
 0xf7b   :  { %v3133_v44 = vpop.eup %3132 }
 0xf7c   :  { %v2156_v10 = vsel %vm627_vm7, %v3133_v44, 0.0 }
 0xf7d   :  { %2157 = vadd.xlane.f32.xlu0 %v2156_v10 }
 0xf7f   :  { %v3135_v52 = vpop.eup %3134 }
 0xf80   :  { %v2159_v57 = vsel %vm627_vm7, %v3135_v52, 0.0 }
 0xf81   :  { %2160 = vadd.xlane.f32.xlu0 %v2159_v57 }
 0xf97   :  { %2244 = vrot.lane.b32.xlu0 %v3760_v49, %s3403_s16  ;;  %v2336_v49 = vld [vmem:[#allocation7 + $0x38] sm:$0xff] }
 0xf98   :  { %3046 = vmatprep.subr.mxu0 %v2336_v49 }
0x1006   :  { %v2158_v53 = vpop.xlane.xlu0 %2157 }
0x1007   :  { %3136 = vrcp.f32 %v2158_v53 }
0x100a   :  { %v2161_v13 = vpop.xlane.xlu0 %2160 }
0x100b   :  { %3138 = vrcp.f32 %v2161_v13 }
0x100e   :  { %v2245_v15 = vpop.permute.xlu0 %2244 }
0x100f   :  { %3042 = vmatpush3.msra.mxu1 %v2245_v15 }
0x1010   :  { %3057 = vmatprep.subr.mxu1 %v2432_v27 }
0x1014   :  { %v3137_v16 = vpop.eup %3136 }
0x1015   :  { %v3867_v18 = vmul.f32 %v3137_v16, %v3133_v44 }
0x1017   :  { %v2166_v19 = vmul.f32 %v3827_v43, %v3867_v18 }
0x1018   :  { %v3139_v22 = vpop.eup %3138 }
0x1019   :  { %3039 = vmatmul.mubr.msk.f32.vlgmr.msra.gmra.mxu0 %vm627_vm7, %v2166_v19  ;;  %v3872_v47 = vmul.f32 %v3139_v22, %v3135_v52  ;;  %v3170_v19 = vld [vmem:[#allocation13] ss:$0 sm:$0xff] }
0x101a   :  { %3047 = vmatpush3.msra.mxu0 %v2336_v49 }
0x101b   :  { %v2167_v23 = vmul.f32 %v2800_v31, %v3872_v47  ;;  %3048 = vmatprep.subr.mxu0 %v2335_v25  ;;  %v2431_v31 = vld [vmem:[#allocation10 + $0x30] sm:$0xff] }
0x101c   :  { %3049 = vmatpush3.msra.mxu0 %v2335_v25  ;;  %v2589_v25 = vld [vmem:[%s3988_s10] sm:$0xff] }
0x101d   :  { %3044 = vmatmul.mubr.msk.f32.vlgmr.msra.gmra.mxu1 %vm627_vm7, %v2167_v23  ;;  %3050 = vmatprep.subr.mxu0 %v2334_v26 }
0x101e   :  { %3051 = vmatpush3.msra.mxu0 %v2334_v26  ;;  %3058 = vmatpush3.msra.mxu1 %v2432_v27 }
0x101f   :  { %3052 = vmatprep.subr.mxu0 %v2333_v28  ;;  %3059 = vmatprep.subr.mxu1 %v2431_v31 }
0x1020   :  { %3053 = vmatpush3.msra.mxu0 %v2333_v28  ;;  %3060 = vmatpush3.msra.mxu1 %v2431_v31  ;;  %v3171_v28 = vld [vmem:[%s3987_s9] ss:$0 sm:$0xff] }
0x1021   :  { %3061 = vmatprep.subr.mxu1 %v2430_v33 }
0x1022   :  { %3062 = vmatpush3.msra.mxu1 %v2430_v33 }
0x1023   :  { %3063 = vmatprep.subr.mxu1 %v2429_v48 }
0x1024   :  { %3064 = vmatpush3.msra.mxu1 %v2429_v48 }
0x10d9   :  { %v2240_v29 = vpop.f32.mrf.mxu0 }
0x10da   :  { %2322 = vrot.lane.b32.xlu1 %v2240_v29, %s3385_s21 }
0x10db   :  { %v3040_v30 = vpop.f32.mrf.mxu0 }
0x10dd   :  { %v2316_v32 = vpop.f32.mrf.mxu1 }
0x10de   :  { %2324 = vrot.lane.b32.xlu1 %v2316_v32, %s3385_s21  ;;  %v2591_v32 = vld [vmem:[%s3989_s11] sm:$0xff] }
0x10df   :  { %v3045_v35 = vpop.f32.mrf.mxu1 }
0x114c   :  { %v2323_v37 = vpop.permute.xlu1 %2322 }
0x114d   :  { %v2328_v39 = vsel %vm471_vm2, %v3851_v51, %v2323_v37 }
0x114e   :  { %v2330_v41 = vadd.f32 %v2328_v39, %v3737_v34  ;;  %v2816_v34 = vld [vmem:[#allocation8 + $0x1] ss:$0 sm:$0xff]  ;;  %v2590_v39 = vld [vmem:[%s3988_s10 + $0x8] sm:$0xff] }
0x1150   :  { %3054 = vmatprep.mubr.msk.f32.mxu0 %vm153_vm0, %v2330_v41  ;;  %v2325_v43 = vpop.permute.xlu1 %2324 }
0x1151   :  { %v2329_v24 = vsel %vm471_vm2, %v3853_v56, %v2325_v43 }
0x1152   :  { %v2331_v45 = vadd.f32 %v2329_v24, %v3742_v40 }
0x1154   :  { %3055 = vmatmul.mubr.msk.f32.vlgmr.msra.gmra.mxu0 %vm153_vm0, %v2331_v45 }
0x1214   :  { %v3056_v50 = vpop.f32.mrf.mxu0 }
0x1215   :  { %v2423_v51 = vadd.f32 %v3056_v50, %v2816_v34  ;;  %v3916_v50 = vld [vmem:[%s3990_s12] sm:$0xff] }
0x1216   :  { %v2417_v55 = vpop.f32.mrf.mxu0 }
0x1217   :  { %v2418_v56 = vadd.f32 %v2816_v34, %v2417_v55  ;;  %v2427_v58 = vmax.f32 %v2423_v51, 0.0  ;;  %v3921_v51 = vld [vmem:[%s3990_s12 + $0x8] sm:$0xff]  ;;  %v2636_v55 = vsel %vm2635_vm1, %v3916_v50, 0.0 }
0x1219   :  { %v2426_v40 = vmax.f32 %v2418_v56, 0.0  ;;  %v2637_v56 = vsel %vm2635_vm1, %v3921_v51, 0.0 }
0x121b   :  { %3065 = vmatprep.mubr.msk.f32.mxu1 %vm153_vm0, %v2426_v40  ;;  %v2638_v40 = vadd.f32 %v2637_v56, %v2636_v55 }
0x121c   :  { %3066 = vmatmul.mubr.msk.f32.vlgmr.msra.gmra.mxu1 %vm153_vm0, %v2427_v58 }
0x12dc   :  { %v3067_v60 = vpop.f32.mrf.mxu1 }
0x12dd   :  { %v2519_v61 = vadd.f32 %v3067_v60, %v2819_v59 }
0x12de   :  { %v2513_v62 = vpop.f32.mrf.mxu1 }
0x12df   :  { %v2523_v1 = vadd.f32 %v2519_v61, %v2331_v45  ;;  %v2514_v2 = vadd.f32 %v2819_v59, %v2513_v62  ;;  %v2592_v45 = vld [vmem:[%s3989_s11 + $0x8] sm:$0xff]  ;;  %s3404_s11 = smov 24  }
0x12e1   :  { %v2522_v4 = vadd.f32 %v2514_v2, %v2330_v41  ;;  %v2525_v63 = vmul.f32 %v2523_v1, %v3724_v0 }
0x12e3   :  { %v2529_v7 = vsel %vm153_vm0, %v2525_v63, 0.0  ;;  %v2524_v8 = vmul.f32 %v2522_v4, %v3726_v3 }
0x12e4   :  { %2530 = vadd.xlane.f32.xlu0 %v2529_v7 }
0x12e5   :  { %v2526_v36 = vsel %vm153_vm0, %v2524_v8, 0.0 }
0x12e6   :  { %2527 = vadd.xlane.f32.xlu1 %v2526_v36 }
0x136d   :  { %v2531_v9 = vpop.xlane.xlu0 %2530 }
0x136e   :  { %v2533_v54 = vmul.f32 0.03125, %v2531_v9 }
0x136f   :  { %v2528_v6 = vpop.xlane.xlu1 %2527 }
0x1370   :  { %v2532_v5 = vmul.f32 0.03125, %v2528_v6  ;;  %v2535_v11 = vsub.f32 %v2525_v63, %v2533_v54 }
0x1372   :  { %v2534_v12 = vsub.f32 %v2524_v8, %v2532_v5  ;;  %v2537_v52 = vmul.f32 %v2535_v11, %v2535_v11  ;;  %v2547_v26 = vmul.f32 %v3170_v19, %v2535_v11 }
0x1374   :  { %v2536_v44 = vmul.f32 %v2534_v12, %v2534_v12  ;;  %v2541_v0 = vsel %vm153_vm0, %v2537_v52, 0.0  ;;  %v2546_v22 = vmul.f32 %v3170_v19, %v2534_v12 }
0x1376   :  { %v2538_v10 = vsel %vm153_vm0, %v2536_v44, 0.0 }
0x1377   :  { %2539 = vadd.xlane.f32.xlu0 %v2538_v10 }
0x137b   :  { %2542 = vadd.xlane.f32.xlu0 %v2541_v0 }
0x1400   :  { %v2540_v57 = vpop.xlane.xlu0 %2539 }
0x1401   :  { %v2544_v3 = vmul.f32 0.03125, %v2540_v57 }
0x1403   :  { %v2548_v53 = vadd.f32 1e-08, %v2544_v3 }
0x1404   :  { %v2543_v13 = vpop.xlane.xlu0 %2542 }
0x1405   :  { %3140 = vrsqrt.f32 %v2548_v53  ;;  %v2545_v15 = vmul.f32 0.03125, %v2543_v13 }
0x1407   :  { %v2549_v16 = vadd.f32 1e-08, %v2545_v15 }
0x1409   :  { %3142 = vrsqrt.f32 %v2549_v16 }
0x1412   :  { %v3141_v23 = vpop.eup %3140 }
0x1413   :  { %v2552_v49 = vmul.f32 %v3141_v23, %v2546_v22 }
0x1415   :  { %v2554_v29 = vadd.f32 %v3171_v28, %v2552_v49 }
0x1416   :  { %v3143_v30 = vpop.eup %3142 }
0x1417   :  { %v2595_v35 = vmul.f32 %v2589_v25, %v2554_v29  ;;  %v2553_v37 = vmul.f32 %v3143_v30, %v2547_v26  ;;  %v2603_v43 = vmul.f32 %v2591_v32, %v2554_v29 }
0x1419   :  { %v2597_v41 = vsel %vm153_vm0, %v2595_v35, 0.0  ;;  %v2555_v24 = vadd.f32 %v3171_v28, %v2553_v37  ;;  %v2605_v31 = vsel %vm153_vm0, %v2603_v43, 0.0 }
0x141a   :  { %2598 = vadd.xlane.f32.xlu1 %v2597_v41 }
0x141b   :  { %v2596_v27 = vmul.f32 %v2590_v39, %v2555_v24  ;;  %v2604_v48 = vmul.f32 %v2592_v45, %v2555_v24 }
0x141d   :  { %v2600_v33 = vsel %vm153_vm0, %v2596_v27, 0.0  ;;  %v2608_v34 = vsel %vm153_vm0, %v2604_v48, 0.0 }
0x141e   :  { %2606 = vadd.xlane.f32.xlu1 %v2605_v31  ;;  %2601 = vadd.xlane.f32.xlu0 %v2600_v33 }
0x1422   :  { %2609 = vadd.xlane.f32.xlu0 %v2608_v34  ;;  %2639 = vadd.xlane.f32.xlu1 %v2638_v40 }
0x14a3   :  { %v2599_v58 = vpop.xlane.xlu1 %2598 }
0x14a4   :  { %v2822_v59 = vmul.f32 -1.442695, %v2599_v58 }
0x14a6   :  { %3144 = vpow2.f32 %v2822_v59 }
0x14a7   :  { %v2607_v60 = vpop.xlane.xlu1 %2606  ;;  %v2602_v61 = vpop.xlane.xlu0 %2601 }
0x14a8   :  { %v2824_v62 = vmul.f32 -1.442695, %v2607_v60  ;;  %v2688_v1 = vsub.f32 %v2599_v58, %v2607_v60  ;;  %v2823_v2 = vmul.f32 -1.442695, %v2602_v61 }
0x14aa   :  { %3146 = vpow2.f32 %v2824_v62  ;;  %vm2690_vm9 = vcmp.gt.f32.partialorder %v2688_v1, 0.0  ;;  %vm2692_vm10 = vcmp.lt.f32.partialorder %v2688_v1, 0.0 }
0x14ab   :  { %v2694_v4 = vsel %vm2692_vm10, -1.0, %v3395_v14  ;;  %3148 = vpow2.f32 %v2823_v2  ;;  %v2610_v63 = vpop.xlane.xlu0 %2609  ;;  %v2640_v29 = vpop.xlane.xlu1 %2639 }
0x14ac   :  { %v2696_v7 = vsel %vm2690_vm9, 1.0, %v2694_v4  ;;  %v2825_v8 = vmul.f32 -1.442695, %v2610_v63  ;;  %v2689_v36 = vsub.f32 %v2602_v61, %v2610_v63  ;;  %v2641_v32 = vrot.slane %v2640_v29, 4 }
0x14ad   :  { %v2698_v9 = vadd.f32 1.0, %v2696_v7 }
0x14ae   :  { %3150 = vpow2.f32 %v2825_v8  ;;  %vm2691_vm11 = vcmp.gt.f32.partialorder %v2689_v36, 0.0  ;;  %vm2693_vm12 = vcmp.lt.f32.partialorder %v2689_v36, 0.0  ;;  %v2642_v41 = vadd.f32 %v2641_v32, %v2640_v29 }
0x14af   :  { %v2700_v54 = vmul.f32 0.5, %v2698_v9  ;;  %v2695_v6 = vsel %vm2693_vm12, -1.0, %v3395_v14 }
0x14b0   :  { %v2697_v5 = vsel %vm2691_vm11, 1.0, %v2695_v6  ;;  %v2643_v24 = vrot.slane %v2642_v41, 2 }
0x14b1   :  { %v2699_v11 = vadd.f32 1.0, %v2697_v5  ;;  %v2702_v10 = vmul.f32 %v2700_v54, %v3916_v50 }
0x14b2   :  { %v2644_v27 = vadd.f32 %v2643_v24, %v2642_v41 }
0x14b3   :  { %v3145_v12 = vpop.eup %3144  ;;  %v2701_v44 = vmul.f32 0.5, %v2699_v11  ;;  %v2704_v3 = vsel %vm2635_vm1, %v2702_v10, 0.0 }
0x14b4   :  { %v2617_v52 = vadd.f32 1.0, %v3145_v12  ;;  %v2645_v33 = vrot.slane %v2644_v27, 1 }
0x14b5   :  { %v2703_v0 = vmul.f32 %v2701_v44, %v3921_v51 }
0x14b6   :  { %3152 = vrcp.f32 %v2617_v52  ;;  %v2646_v55 = vadd.f32 %v2645_v33, %v2644_v27 }
0x14b7   :  { %v3147_v57 = vpop.eup %3146  ;;  %v2705_v53 = vsel %vm2635_vm1, %v2703_v0, 0.0 }
0x14b8   :  { %v3149_v13 = vpop.eup %3148  ;;  %v2629_v15 = vadd.f32 1.0, %v3147_v57  ;;  %v2706_v16 = vadd.f32 %v2705_v53, %v2704_v3  ;;  %3068 = vpush %v2646_v55 }
0x14b9   :  { %v2618_v19 = vadd.f32 1.0, %v3149_v13 }
0x14ba   :  { %3154 = vrcp.f32 %v2629_v15  ;;  %2707 = vadd.xlane.f32.xlu1 %v2706_v16 }
0x14bb   :  { %v3151_v14 = vpop.eup %3150  ;;  %3156 = vrcp.f32 %v2618_v19 }
0x14bc   :  { %v2630_v22 = vadd.f32 1.0, %v3151_v14 }
0x14be   :  { %3158 = vrcp.f32 %v2630_v22 }
0x14c3   :  { %v3153_v23 = vpop.eup %3152 }
0x14c4   :  { %v2649_v49 = vadd.f32 1e-24, %v3153_v23 }
0x14c6   :  { %3160 = vlog2.f32 %v2649_v49 }
0x14c7   :  { %v3155_v25 = vpop.eup %3154 }
0x14c8   :  { %v3157_v26 = vpop.eup %3156  ;;  %v2659_v28 = vsub.f32 1.0, %v3155_v25 }
0x14c9   :  { %v2650_v30 = vadd.f32 1e-24, %v3157_v26 }
0x14ca   :  { %v2661_v35 = vadd.f32 1e-24, %v2659_v28 }
0x14cb   :  { %v3159_v37 = vpop.eup %3158  ;;  %3162 = vlog2.f32 %v2650_v30  ;;  %2560 = vrot.lane.b32.xlu1 %v3696_v20, %s3391_s24 }
0x14cc   :  { %3164 = vlog2.f32 %v2661_v35  ;;  %v2660_v39 = vsub.f32 1.0, %v3159_v37 }
0x14ce   :  { %v2662_v43 = vadd.f32 1e-24, %v2660_v39 }
0x14cf   :  { %2566 = vrot.lane.b32.xlu1 %v3824_v21, %s3385_s21 }
0x14d0   :  { %3166 = vlog2.f32 %v2662_v43 }
0x14d3   :  { %v3161_v45 = vpop.eup %3160  ;;  %2568 = vrot.lane.b32.xlu1 %v3832_v46, %s3385_s21  ;;  %s3405_s21 = smov [#allocation14]  }
0x14d4   :  { %v2652_v31 = vmul.f32 0.6931472, %v3161_v45  ;;  %s2725_s27 = sshll.u32 %s3405_s21, 4  ;;  %s2726_s27 = int_to_ptr.vmem [resolvable:$true] %s2725_s27 }
0x14d5   :  { %s3312_s17 = scalar_lea.vmem %s2726_s27, 16  ;;  %s3316_s18 = scalar_lea.vmem %s2726_s27, 32 }
0x14d6   :  { %v2655_v56 = vmul.f32 %v2652_v31, %v3916_v50  ;;  %p3313_p7 = scmp.ne.s32.totalorder %s2726_s27, %s3312_s17  ;;  %p3317_p8 = scmp.lt.s32.totalorder %s2726_s27, %s2726_s27 }
0x14d7   :  { %2576 = vrot.lane.b32.xlu1 %v3872_v47, %s3404_s11  ;;  %p3318_p9 = scmp.lt.s32.totalorder %s3316_s18, %s3312_s17 }
0x14d8   :  { %v3163_v20 = vpop.eup %3162  ;;  %v2657_v46 = vsub.f32 0.0, %v2655_v56 }
0x14d9   :  { %v3165_v48 = vpop.eup %3164  ;;  %v2654_v34 = vmul.f32 0.6931472, %v3163_v20  ;;  %p3319_p10 = por %p3318_p9, %p3317_p8 }
0x14da   :  { %v2664_v40 = vmul.f32 0.6931472, %v3165_v48 }
0x14db   :  { %v2656_v21 = vmul.f32 %v2654_v34, %v3921_v51  ;;  %p3320_p11 = pnand %p3319_p10, %p3313_p7 }
0x14dc   :  { %v2667_v58 = vmul.f32 %v2664_v40, %v3916_v50 }
0x14dd   :  { %v3167_v59 = vpop.eup %3166  ;;  %v2658_v61 = vsub.f32 0.0, %v2656_v21 }
0x14de   :  { %v2666_v60 = vmul.f32 0.6931472, %v3167_v59  ;;  %v2669_v47 = vsub.f32 %v2657_v46, %v2667_v58 }
0x14e0   :  { %v2668_v62 = vmul.f32 %v2666_v60, %v3921_v51  ;;  %v2671_v2 = vsel %vm2635_vm1, %v2669_v47, 0.0 }
0x14e2   :  { %v2670_v1 = vsub.f32 %v2658_v61, %v2668_v62 }
0x14e4   :  { %v2672_v4 = vsel %vm2635_vm1, %v2670_v1, 0.0 }
0x14e5   :  { %v2673_v63 = vadd.f32 %v2672_v4, %v2671_v2 }
0x14e7   :  { %2674 = vadd.xlane.f32.xlu0 %v2673_v63 }
0x14e9   :  { %s3069_s12 = spop %3068 }
0x14ea   :  { %v2648_v22 = vstv %s3069_s12 }
0x14eb   :  { %3168 = vrcp.f32 %v2648_v22 }
0x14fd   :  { %2558 = vrot.lane.b32.xlu0 %v3691_v17, %s3391_s24 }
0x1501   :  { %2574 = vrot.lane.b32.xlu0 %v3867_v18, %s3404_s11 }
0x1543   :  { %v2708_v50 = vpop.xlane.xlu1 %2707 }
0x1544   :  { %v2709_v5 = vrot.slane %v2708_v50, 4 }
0x1546   :  { %v2710_v11 = vadd.f32 %v2709_v5, %v2708_v50 }
0x1547   :  { %v2561_v7 = vpop.permute.xlu1 %2560 }
0x1548   :  { %v2581_v51 = vsel %vm627_vm7, %v3656_v42, %v2561_v7  ;;  %v2711_v17 = vrot.slane %v2710_v11, 2 }
0x154a   :  { %v2712_v52 = vadd.f32 %v2711_v17, %v2710_v11 }
0x154b   :  { %v2567_v8 = vpop.permute.xlu1 %2566 }
0x154c   :  { %v2713_v13 = vrot.slane %v2712_v52, 1 }
0x154e   :  { %v2714_v14 = vadd.f32 %v2713_v13, %v2712_v52 }
0x154f   :  { %v2569_v36 = vpop.permute.xlu1 %2568 }
0x1550   :  { %v2583_v9 = vsel %vm471_vm2, %v2581_v51, %v2569_v36 }
0x1553   :  { %v2577_v54 = vpop.permute.xlu1 %2576 }
0x1554   :  { %v2586_v6 = vsel %vm2584_vm13, %v2583_v9, %v2577_v54 }
0x1555   :  { %2588 = vst.msk [vmem:[#allocation17 + $0x8] sm:$0xff] %vm153_vm0, %v2586_v6 }
0x1570   :  { %v2675_v12 = vpop.xlane.xlu0 %2674 }
0x1571   :  { %v2676_v18 = vrot.slane %v2675_v12, 4 }
0x1573   :  { %v2677_v44 = vadd.f32 %v2676_v18, %v2675_v12 }
0x1574   :  { %v2559_v10 = vpop.permute.xlu0 %2558 }
0x1575   :  { %v2678_v0 = vrot.slane %v2677_v44, 2  ;;  %v2580_v57 = vsel %vm627_vm7, %v3648_v38, %v2559_v10  ;;  %v3169_v38 = vpop.eup %3168 }
0x1576   :  { %v2582_v53 = vsel %vm471_vm2, %v2580_v57, %v2567_v8  ;;  %vm2686_vm2 = vcmask 0  }
0x1577   :  { %v2679_v42 = vadd.f32 %v2678_v0, %v2677_v44 }
0x1578   :  { %v2575_v3 = vpop.permute.xlu0 %2574 }
0x1579   :  { %v2585_v15 = vsel %vm2584_vm13, %v2582_v53, %v2575_v3  ;;  %v2680_v16 = vrot.slane %v2679_v42, 1 }
0x157a   :  { %2587 = vst.msk [vmem:[#allocation17] sm:$0xff] %vm153_vm0, %v2585_v15 }
0x157b   :  { %v2681_v19 = vadd.f32 %v2680_v16, %v2679_v42 }
0x157d   :  { %3070 = vpush %v2681_v19 }
0x157e   :  { %3072 = vpush %v2714_v14 }
0x15ae   :  { %s3071_s28 = spop %3070 }
0x15af   :  { %v2683_v23 = vstv %s3071_s28  ;;  %s3073_s16 = spop %3072 }
0x15b0   :  { %v2685_v49 = vmul.f32 %v3169_v38, %v2683_v23  ;;  %v2716_v25 = vstv %s3073_s16 }
0x15b1   :  { %v2717_v26 = vmul.f32 %v3169_v38, %v2716_v25 }
0x15b2   :  { %2687 = vst.msk [vmem:[#allocation14] sm:$0x1] %vm2686_vm2, %v2685_v49 }
0x15b3   :  { %2718 = vst.msk [vmem:[#allocation15] sm:$0x1] %vm2686_vm2, %v2717_v26 }
0x15b4   :  { %3323 = shalt.err (!%p3320_p11)
}
0x15b5   :  { %2728 = dma.vmem_to_hbm [thread:$0]  %s2726_s27, 16, %s3991_s13, [#allocation4]  }
0x15b6   :  { %s3332_s20 = scalar_lea.vmem %s2736_s30, 16  ;;  %s3336_s4 = scalar_lea.vmem %s2736_s30, 32 }
0x15b7   :  { %p3333_p12 = scmp.ne.s32.totalorder %s2736_s30, %s3332_s20  ;;  %p3337_p13 = scmp.lt.s32.totalorder %s2736_s30, %s2736_s30 }
0x15b8   :  { %p3338_p0 = scmp.lt.s32.totalorder %s3336_s4, %s3332_s20 }
0x15ba   :  { %p3339_p1 = por %p3338_p0, %p3337_p13 }
0x15bc   :  { %p3340_p2 = pnand %p3339_p1, %p3333_p12 }
0x15be   :  { %3343 = shalt.err (!%p3340_p2)
}
0x15bf   :  { %2738 = dma.vmem_to_hbm [thread:$0]  %s2736_s30, 16, %s3992_s14, [#allocation16]  }
0x15c0   :  { %s3352_s6 = scalar_lea.vmem %s3959_s3, 256  ;;  %p3357_p4 = scmp.lt.s32.totalorder %s3959_s3, %s3959_s3 }
0x15c1   :  { %p3353_p3 = scmp.ne.s32.totalorder %s3959_s3, %s3352_s6  ;;  %p3358_p5 = scmp.lt.s32.totalorder %s3352_s6, %s3352_s6 }
0x15c3   :  { %p3359_p6 = por %p3358_p5, %p3357_p4 }
0x15c5   :  { %p3360_p7 = pnand %p3359_p6, %p3353_p3 }
0x15c7   :  { %3363 = shalt.err (!%p3360_p7)
}
0x15c8   :  { %2750 = dma.vmem_to_hbm [thread:$0]  %s3959_s3, 256, %s3993_s15, [#allocation16], %s3390_s5, %s3390_s5, %s3391_s24  }
0x15c9   :  { %3380 = dma.done.wait [#allocation4], 16  }
0x15ca   :  { %3381 = vsyncadd [#allocation4], 4294967280 }
0x15cb   :  { %3382 = dma.done.wait [#allocation16], 272  }
0x15cc   :  { %3383 = vsyncadd [#allocation16], 4294967024 }
0x15cd   :  { %2760 = vsyncpa [#allocation3], 1 }
0x15ce   :  { %2761 = vsyncpa [#allocation6], 1 }
0x15cf   :  { %2762 = vsyncpa [#allocation9], 1 }
0x15d0   :  { %2763 = vsyncpa [#allocation12], 1 }
0x15d1   :  { %2764 = vsyncpa [#allocation4], 1 }
0x15d2   :  { %2765 = vsyncpa [#allocation16], 1 }

</bundles_post_ra>
